<compile_context>
chip_gen: v7x
topology: tpu7x:2x2x1
jax: 0.10.0
libtpu: 0.0.40
codegen_flags: <defaults>
</compile_context>

<pallas_src>
import functools

import jax
import jax.numpy as jnp
from jax.experimental import pallas as pl
from jax.experimental.pallas import tpu as pltpu

# ----------------------------- config ---------------------------------------
BATCH = 2
SEQ_LEN = 16          # pad_size
HIDDEN = 32           # bert hidden_size (small synthetic)
NUM_FILTERS = 8       # config.num_filters
NUM_CLASSES = 4       # config.num_classes
VOCAB = 30


def _round_up8(n):
    return ((n + 7) // 8) * 8


def _param_layout(H, F):
    """Row offsets of each parameter block inside the packed (rows, F) array."""
    o_wr = 0                                  # (3H, F) conv_region weight
    o_br = o_wr + _round_up8(3 * H)           # (1, F)  conv_region bias
    o_wc = o_br + 8                           # (3F, F) conv weight
    o_bc = o_wc + _round_up8(3 * F)           # (1, F)  conv bias
    o_wfc = o_bc + 8                          # (F, C)  fc weight (lane-padded to F)
    o_bfc = o_wfc + _round_up8(F)             # (1, C)  fc bias   (lane-padded to F)
    total = o_bfc + 8
    return o_wr, o_br, o_wc, o_bc, o_wfc, o_bfc, total


# --------------------------- Pallas kernel ----------------------------------
def _dpcnn_kernel(enc_ref, p_ref, o_ref, pad_ref, *, B, S, H, F, C):
    """Whole batch in one invocation; all heights static -> fully unrolled.

    enc_ref : (B*S, H)  encoder output, samples back-to-back (band stride S)
    p_ref   : (rows, F) packed parameters (see _param_layout)
    o_ref   : (B, C)    logits
    pad_ref : (B*S, F)  zero-bordered staging scratch, band stride S per sample
    """
    band = S                 # per-sample band stride in pad_ref (>= max_h + 2)
    h0 = S - 2               # height after conv_region

    # ---- unpack packed params (static, 8-row-aligned slices; loaded once) ----
    o_wr, o_br, o_wc, o_bc, o_wfc, o_bfc, _ = _param_layout(H, F)
    wr = [p_ref[o_wr + k * H:o_wr + (k + 1) * H, :] for k in range(3)]   # (H,F)x3
    br = p_ref[o_br:o_br + 1, :]                                         # (1,F)
    wc = [p_ref[o_wc + k * F:o_wc + (k + 1) * F, :] for k in range(3)]   # (F,F)x3
    bc = p_ref[o_bc:o_bc + 1, :]                                         # (1,F)
    wfc = p_ref[o_wfc:o_wfc + F, :]                                      # (F,F) 0-padded lanes
    bfc = p_ref[o_bfc:o_bfc + 1, :]                                      # (1,F) 0-padded lanes
    zrow = jnp.zeros((1, F), jnp.float32)

    # zero the staging scratch ONCE: every zero border comes for free afterwards
    pad_ref[...] = jnp.zeros((B * band, F), jnp.float32)

    # trace-time set of per-band padded-row indices that may hold stale nonzeros
    dirty = set()

    def store_bands(vals, h):
        """Write one h-row map per sample into padded rows 1..h of its band."""
        if (h + 1) in dirty:         # bottom border is stale from a taller map
            for b in range(B):
                pad_ref[b * band + h + 1:b * band + h + 2, :] = zrow
            dirty.discard(h + 1)
        for b in range(B):
            pad_ref[b * band + 1:b * band + 1 + h, :] = vals[b]
        dirty.update(range(1, h + 1))

    def conv3(h):
        """3-tap conv over every band at once: 3 accumulating (R,F)@(F,F) dots."""
        R = (B - 1) * band + h
        acc = jnp.dot(pad_ref[0:R, :], wc[0], preferred_element_type=jnp.float32)
        acc = acc + jnp.dot(pad_ref[1:R + 1, :], wc[1],
                            preferred_element_type=jnp.float32)
        acc = acc + jnp.dot(pad_ref[2:R + 2, :], wc[2],
                            preferred_element_type=jnp.float32)
        acc = acc + bc
        # valid output rows of sample b form the contiguous band [b*band, b*band+h)
        return [acc[b * band:b * band + h, :] for b in range(B)]

    def conv_pad1(xs, h):
        """relu -> ZeroPad2d((0,0,1,1)) -> Conv2d(F,F,(3,1)), whole batch."""
        store_bands([jax.nn.relu(x) for x in xs], h)
        return conv3(h)

    def max_pool(xs, h):
        """ZeroPad2d((0,0,0,1)) -> MaxPool2d((3,1), stride=2) via strided reads."""
        hp = (h - 2) // 2 + 1
        store_bands(xs, h)           # bottom pad row h+1 is already zero
        out = []
        for b in range(B):
            base = b * band + 1
            w0 = pad_ref[pl.ds(base + 0, hp, stride=2), :]
            w1 = pad_ref[pl.ds(base + 1, hp, stride=2), :]
            w2 = pad_ref[pl.ds(base + 2, hp, stride=2), :]
            out.append(jnp.maximum(jnp.maximum(w0, w1), w2))
        return out, hp

    # ---- conv_region: Conv2d(1, F, (3, H)) -> 3 accumulating dots, whole batch
    R0 = (B - 1) * S + h0
    acc = jnp.dot(enc_ref[0:R0, :].astype(jnp.float32), wr[0],
                  preferred_element_type=jnp.float32)
    acc = acc + jnp.dot(enc_ref[1:R0 + 1, :].astype(jnp.float32), wr[1],
                        preferred_element_type=jnp.float32)
    acc = acc + jnp.dot(enc_ref[2:R0 + 2, :].astype(jnp.float32), wr[2],
                        preferred_element_type=jnp.float32)
    acc = acc + br
    xs = [acc[b * S:b * S + h0, :] for b in range(B)]
    h = h0

    xs = conv_pad1(xs, h)
    xs = conv_pad1(xs, h)

    # repeated DPCNN blocks until height <= 2 (heights static -> unrolled)
    while h > 2:
        pxs, hp = max_pool(xs, h)
        xs = conv_pad1(pxs, hp)
        xs = conv_pad1(xs, hp)
        xs = [x + px for x, px in zip(xs, pxs)]
        h = hp

    # xs[b] is (1, F); torch .squeeze() -> (B, F); final fc
    xf = jnp.concatenate(xs, axis=0)                                   # (B, F)
    logits = jnp.dot(xf, wfc, preferred_element_type=jnp.float32) + bfc
    o_ref[...] = logits[:, 0:C].astype(o_ref.dtype)


def dpcnn_forward(encoder_out, wr, br, wc, bc, wfc, bfc):
    B, S, H = encoder_out.shape
    F = wr.shape[2]
    C = wfc.shape[1]

    # ---- pack all parameters into ONE (rows, F) array (2 DMAs total) ----
    o_wr, o_br, o_wc, o_bc, o_wfc, o_bfc, total = _param_layout(H, F)
    P = jnp.zeros((total, F), jnp.float32)
    P = P.at[o_wr:o_wr + 3 * H, :].set(wr.reshape(3 * H, F))
    P = P.at[o_br, :].set(br[0])
    P = P.at[o_wc:o_wc + 3 * F, :].set(wc.reshape(3 * F, F))
    P = P.at[o_bc, :].set(bc[0])
    P = P.at[o_wfc:o_wfc + F, :C].set(wfc)
    P = P.at[o_bfc, :C].set(bfc[0])

    enc2 = encoder_out.reshape(B * S, H).astype(jnp.float32)

    vmem = pl.BlockSpec(memory_space=pltpu.MemorySpace.VMEM)
    kernel = functools.partial(_dpcnn_kernel, B=B, S=S, H=H, F=F, C=C)
    return pl.pallas_call(
        kernel,
        out_shape=jax.ShapeDtypeStruct((B, C), jnp.float32),
        in_specs=[vmem, vmem],
        out_specs=vmem,
        scratch_shapes=[pltpu.VMEM((B * S, F), jnp.float32)],  # padded staging
    )(enc2, P)


# ------------------------- pure-JAX reference --------------------------------
def _ref_single(enc, wr, br, wc, bc, wfc, bfc):
    S, H = enc.shape
    F = wr.shape[2]

    def pad1(x):
        z = jnp.zeros((1, F), jnp.float32)
        return jnp.concatenate([z, x, z], axis=0)

    def pad2(x):
        z = jnp.zeros((1, F), jnp.float32)
        return jnp.concatenate([x, z], axis=0)

    def conv(x):
        h = x.shape[0]
        acc = jnp.zeros((h - 2, F), jnp.float32)
        for k in range(3):
            acc = acc + x[k:k + h - 2] @ wc[k]
        return acc + bc

    def max_pool(x):
        h = x.shape[0]
        hp = (h - 3) // 2 + 1
        return jnp.concatenate(
            [jnp.max(x[2 * i:2 * i + 3], axis=0, keepdims=True)
             for i in range(hp)], axis=0)

    h0 = S - 2
    x = jnp.zeros((h0, F), jnp.float32)
    for k in range(3):
        x = x + enc[k:k + h0] @ wr[k]
    x = x + br
    x = conv(jax.nn.relu(pad1(x)))
    x = conv(jax.nn.relu(pad1(x)))
    while x.shape[0] > 2:
        px = max_pool(pad2(x))
        x = conv(jax.nn.relu(pad1(px)))
        x = conv(jax.nn.relu(pad1(x)))
        x = x + px
    return (x @ wfc + bfc)[0]


# ------------------------------- main ----------------------------------------
if __name__ == "__main__":
    key = jax.random.PRNGKey(0)
    keys = jax.random.split(key, 10)

    # synthetic "bert" stand-in (deterministic): token + position embeddings
    token_ids = jax.random.randint(keys[0], (BATCH, SEQ_LEN), 0, VOCAB)
    mask = jnp.ones((BATCH, SEQ_LEN), jnp.int32)          # unused by stand-in
    emb_table = 0.1 * jax.random.normal(keys[1], (VOCAB, HIDDEN), jnp.float32)
    pos_emb = 0.1 * jax.random.normal(keys[2], (SEQ_LEN, HIDDEN), jnp.float32)
    encoder_out = emb_table[token_ids] + pos_emb[None, :, :]   # (B, S, H)

    # DPCNN parameters (deterministic init; shapes follow the torch module)
    # conv_region: torch (F, 1, 3, H) -> here (3, H, F)
    wr = 0.1 * jax.random.normal(keys[3], (3, HIDDEN, NUM_FILTERS), jnp.float32)
    br = 0.1 * jax.random.normal(keys[4], (1, NUM_FILTERS), jnp.float32)
    # conv: torch (F, F, 3, 1) -> here (3, F_in, F_out)
    wc = 0.1 * jax.random.normal(keys[5], (3, NUM_FILTERS, NUM_FILTERS),
                                 jnp.float32)
    bc = 0.1 * jax.random.normal(keys[6], (1, NUM_FILTERS), jnp.float32)
    # fc: torch (C, F) -> here (F, C)
    wfc = 0.1 * jax.random.normal(keys[7], (NUM_FILTERS, NUM_CLASSES),
                                  jnp.float32)
    bfc = 0.1 * jax.random.normal(keys[8], (1, NUM_CLASSES), jnp.float32)

    logits = dpcnn_forward(encoder_out, wr, br, wc, bc, wfc, bfc)
    logits = jax.block_until_ready(logits)

    ref = jax.vmap(functools.partial(
        _ref_single, wr=wr, br=br, wc=wc, bc=bc, wfc=wfc, bfc=bfc))(encoder_out)
    assert logits.shape == (BATCH, NUM_CLASSES)
    assert jnp.allclose(logits, ref, atol=1e-4, rtol=1e-4), (logits, ref)

    print("KERNEL_OK")
</pallas_src>

<mosaic_0001>
module attributes {stable_mosaic.version = 11 : i64} {
  func.func @_dpcnn_kernel(%arg0: memref<32x32xf32, #tpu.memory_space<vmem>>, %arg1: memref<152x8xf32, #tpu.memory_space<vmem>>, %arg2: memref<2x4xf32, #tpu.memory_space<vmem>>, %arg3: memref<32x8xf32, #tpu.memory_space<vmem>>) attributes {dimension_semantics = [], scalar_prefetch = 0 : i64, scratch_operands = 1 : i64, tpu.core_type = #tpu.core_type<tc>} {
    %c0 = arith.constant 0 : index
    %c0_0 = arith.constant 0 : index
    %0 = vector.load %arg1[%c0, %c0_0] : memref<152x8xf32, #tpu.memory_space<vmem>>, vector<32x8xf32>
    %c32 = arith.constant 32 : index
    %c0_1 = arith.constant 0 : index
    %1 = vector.load %arg1[%c32, %c0_1] : memref<152x8xf32, #tpu.memory_space<vmem>>, vector<32x8xf32>
    %c64 = arith.constant 64 : index
    %c0_2 = arith.constant 0 : index
    %2 = vector.load %arg1[%c64, %c0_2] : memref<152x8xf32, #tpu.memory_space<vmem>>, vector<32x8xf32>
    %c96 = arith.constant 96 : index
    %c0_3 = arith.constant 0 : index
    %3 = vector.load %arg1[%c96, %c0_3] : memref<152x8xf32, #tpu.memory_space<vmem>>, vector<1x8xf32>
    %c104 = arith.constant 104 : index
    %c0_4 = arith.constant 0 : index
    %4 = vector.load %arg1[%c104, %c0_4] : memref<152x8xf32, #tpu.memory_space<vmem>>, vector<8x8xf32>
    %c112 = arith.constant 112 : index
    %c0_5 = arith.constant 0 : index
    %5 = vector.load %arg1[%c112, %c0_5] : memref<152x8xf32, #tpu.memory_space<vmem>>, vector<8x8xf32>
    %c120 = arith.constant 120 : index
    %c0_6 = arith.constant 0 : index
    %6 = vector.load %arg1[%c120, %c0_6] : memref<152x8xf32, #tpu.memory_space<vmem>>, vector<8x8xf32>
    %c128 = arith.constant 128 : index
    %c0_7 = arith.constant 0 : index
    %7 = vector.load %arg1[%c128, %c0_7] : memref<152x8xf32, #tpu.memory_space<vmem>>, vector<1x8xf32>
    %c136 = arith.constant 136 : index
    %c0_8 = arith.constant 0 : index
    %8 = vector.load %arg1[%c136, %c0_8] : memref<152x8xf32, #tpu.memory_space<vmem>>, vector<8x8xf32>
    %c144 = arith.constant 144 : index
    %c0_9 = arith.constant 0 : index
    %9 = vector.load %arg1[%c144, %c0_9] : memref<152x8xf32, #tpu.memory_space<vmem>>, vector<1x8xf32>
    %cst = arith.constant 0.000000e+00 : f32
    %10 = vector.broadcast %cst : f32 to vector<1x8xf32>
    %cst_10 = arith.constant 0.000000e+00 : f32
    %11 = vector.broadcast %cst_10 : f32 to vector<32x8xf32>
    %c0_11 = arith.constant 0 : index
    %c0_12 = arith.constant 0 : index
    %12 = vector.load %arg3[%c0_11, %c0_12] : memref<32x8xf32, #tpu.memory_space<vmem>>, vector<32x8xf32>
    tpu.vector_store %arg3[%c0_11, %c0_12], %11 {strides = array<i32>} : memref<32x8xf32, #tpu.memory_space<vmem>>, vector<32x8xf32>,
    %c0_13 = arith.constant 0 : index
    %c0_14 = arith.constant 0 : index
    %13 = vector.load %arg0[%c0_13, %c0_14] : memref<32x32xf32, #tpu.memory_space<vmem>>, vector<30x32xf32>
    %cst_15 = arith.constant dense<0.000000e+00> : vector<30x8xf32>
    %14 = tpu.matmul %13, %0, %cst_15 {dimension_numbers = #tpu.dot_dimension_numbers<[1], [0], [0], [1], [0, 0, 1, 1], [], []>} : vector<30x32xf32>, vector<32x8xf32>, vector<30x8xf32> -> vector<30x8xf32>
    %c1 = arith.constant 1 : index
    %c0_16 = arith.constant 0 : index
    %15 = vector.load %arg0[%c1, %c0_16] : memref<32x32xf32, #tpu.memory_space<vmem>>, vector<30x32xf32>
    %cst_17 = arith.constant dense<0.000000e+00> : vector<30x8xf32>
    %16 = tpu.matmul %15, %1, %cst_17 {dimension_numbers = #tpu.dot_dimension_numbers<[1], [0], [0], [1], [0, 0, 1, 1], [], []>} : vector<30x32xf32>, vector<32x8xf32>, vector<30x8xf32> -> vector<30x8xf32>
    %17 = arith.addf %14, %16 : vector<30x8xf32>
    %c2 = arith.constant 2 : index
    %c0_18 = arith.constant 0 : index
    %18 = vector.load %arg0[%c2, %c0_18] : memref<32x32xf32, #tpu.memory_space<vmem>>, vector<30x32xf32>
    %cst_19 = arith.constant dense<0.000000e+00> : vector<30x8xf32>
    %19 = tpu.matmul %18, %2, %cst_19 {dimension_numbers = #tpu.dot_dimension_numbers<[1], [0], [0], [1], [0, 0, 1, 1], [], []>} : vector<30x32xf32>, vector<32x8xf32>, vector<30x8xf32> -> vector<30x8xf32>
    %20 = arith.addf %17, %19 : vector<30x8xf32>
    %21 = vector.broadcast %3 : vector<1x8xf32> to vector<30x8xf32>
    %22 = arith.addf %20, %21 : vector<30x8xf32>
    %23 = vector.extract_strided_slice %22 {offsets = [0, 0], sizes = [14, 8], strides = [1, 1]} : vector<30x8xf32> to vector<14x8xf32>
    %24 = vector.extract_strided_slice %22 {offsets = [16, 0], sizes = [14, 8], strides = [1, 1]} : vector<30x8xf32> to vector<14x8xf32>
    %cst_20 = arith.constant 0.000000e+00 : f32
    %25 = vector.broadcast %cst_20 : f32 to vector<14x8xf32>
    %26 = arith.maximumf %23, %25 : vector<14x8xf32>
    %cst_21 = arith.constant 0.000000e+00 : f32
    %27 = vector.broadcast %cst_21 : f32 to vector<14x8xf32>
    %28 = arith.maximumf %24, %27 : vector<14x8xf32>
    %c1_22 = arith.constant 1 : index
    %c0_23 = arith.constant 0 : index
    %29 = vector.load %arg3[%c1_22, %c0_23] : memref<32x8xf32, #tpu.memory_space<vmem>>, vector<14x8xf32>
    tpu.vector_store %arg3[%c1_22, %c0_23], %26 {strides = array<i32>} : memref<32x8xf32, #tpu.memory_space<vmem>>, vector<14x8xf32>,
    %c17 = arith.constant 17 : index
    %c0_24 = arith.constant 0 : index
    %30 = vector.load %arg3[%c17, %c0_24] : memref<32x8xf32, #tpu.memory_space<vmem>>, vector<14x8xf32>
    tpu.vector_store %arg3[%c17, %c0_24], %28 {strides = array<i32>} : memref<32x8xf32, #tpu.memory_space<vmem>>, vector<14x8xf32>,
    %c0_25 = arith.constant 0 : index
    %c0_26 = arith.constant 0 : index
    %31 = vector.load %arg3[%c0_25, %c0_26] : memref<32x8xf32, #tpu.memory_space<vmem>>, vector<30x8xf32>
    %cst_27 = arith.constant dense<0.000000e+00> : vector<30x8xf32>
    %32 = tpu.matmul %31, %4, %cst_27 {dimension_numbers = #tpu.dot_dimension_numbers<[1], [0], [0], [1], [0, 0, 1, 1], [], []>} : vector<30x8xf32>, vector<8x8xf32>, vector<30x8xf32> -> vector<30x8xf32>
    %c1_28 = arith.constant 1 : index
    %c0_29 = arith.constant 0 : index
    %33 = vector.load %arg3[%c1_28, %c0_29] : memref<32x8xf32, #tpu.memory_space<vmem>>, vector<30x8xf32>
    %cst_30 = arith.constant dense<0.000000e+00> : vector<30x8xf32>
    %34 = tpu.matmul %33, %5, %cst_30 {dimension_numbers = #tpu.dot_dimension_numbers<[1], [0], [0], [1], [0, 0, 1, 1], [], []>} : vector<30x8xf32>, vector<8x8xf32>, vector<30x8xf32> -> vector<30x8xf32>
    %35 = arith.addf %32, %34 : vector<30x8xf32>
    %c2_31 = arith.constant 2 : index
    %c0_32 = arith.constant 0 : index
    %36 = vector.load %arg3[%c2_31, %c0_32] : memref<32x8xf32, #tpu.memory_space<vmem>>, vector<30x8xf32>
    %cst_33 = arith.constant dense<0.000000e+00> : vector<30x8xf32>
    %37 = tpu.matmul %36, %6, %cst_33 {dimension_numbers = #tpu.dot_dimension_numbers<[1], [0], [0], [1], [0, 0, 1, 1], [], []>} : vector<30x8xf32>, vector<8x8xf32>, vector<30x8xf32> -> vector<30x8xf32>
    %38 = arith.addf %35, %37 : vector<30x8xf32>
    %39 = vector.broadcast %7 : vector<1x8xf32> to vector<30x8xf32>
    %40 = arith.addf %38, %39 : vector<30x8xf32>
    %41 = vector.extract_strided_slice %40 {offsets = [0, 0], sizes = [14, 8], strides = [1, 1]} : vector<30x8xf32> to vector<14x8xf32>
    %42 = vector.extract_strided_slice %40 {offsets = [16, 0], sizes = [14, 8], strides = [1, 1]} : vector<30x8xf32> to vector<14x8xf32>
    %cst_34 = arith.constant 0.000000e+00 : f32
    %43 = vector.broadcast %cst_34 : f32 to vector<14x8xf32>
    %44 = arith.maximumf %41, %43 : vector<14x8xf32>
    %cst_35 = arith.constant 0.000000e+00 : f32
    %45 = vector.broadcast %cst_35 : f32 to vector<14x8xf32>
    %46 = arith.maximumf %42, %45 : vector<14x8xf32>
    %c1_36 = arith.constant 1 : index
    %c0_37 = arith.constant 0 : index
    %47 = vector.load %arg3[%c1_36, %c0_37] : memref<32x8xf32, #tpu.memory_space<vmem>>, vector<14x8xf32>
    tpu.vector_store %arg3[%c1_36, %c0_37], %44 {strides = array<i32>} : memref<32x8xf32, #tpu.memory_space<vmem>>, vector<14x8xf32>,
    %c17_38 = arith.constant 17 : index
    %c0_39 = arith.constant 0 : index
    %48 = vector.load %arg3[%c17_38, %c0_39] : memref<32x8xf32, #tpu.memory_space<vmem>>, vector<14x8xf32>
    tpu.vector_store %arg3[%c17_38, %c0_39], %46 {strides = array<i32>} : memref<32x8xf32, #tpu.memory_space<vmem>>, vector<14x8xf32>,
    %c0_40 = arith.constant 0 : index
    %c0_41 = arith.constant 0 : index
    %49 = vector.load %arg3[%c0_40, %c0_41] : memref<32x8xf32, #tpu.memory_space<vmem>>, vector<30x8xf32>
    %cst_42 = arith.constant dense<0.000000e+00> : vector<30x8xf32>
    %50 = tpu.matmul %49, %4, %cst_42 {dimension_numbers = #tpu.dot_dimension_numbers<[1], [0], [0], [1], [0, 0, 1, 1], [], []>} : vector<30x8xf32>, vector<8x8xf32>, vector<30x8xf32> -> vector<30x8xf32>
    %c1_43 = arith.constant 1 : index
    %c0_44 = arith.constant 0 : index
    %51 = vector.load %arg3[%c1_43, %c0_44] : memref<32x8xf32, #tpu.memory_space<vmem>>, vector<30x8xf32>
    %cst_45 = arith.constant dense<0.000000e+00> : vector<30x8xf32>
    %52 = tpu.matmul %51, %5, %cst_45 {dimension_numbers = #tpu.dot_dimension_numbers<[1], [0], [0], [1], [0, 0, 1, 1], [], []>} : vector<30x8xf32>, vector<8x8xf32>, vector<30x8xf32> -> vector<30x8xf32>
    %53 = arith.addf %50, %52 : vector<30x8xf32>
    %c2_46 = arith.constant 2 : index
    %c0_47 = arith.constant 0 : index
    %54 = vector.load %arg3[%c2_46, %c0_47] : memref<32x8xf32, #tpu.memory_space<vmem>>, vector<30x8xf32>
    %cst_48 = arith.constant dense<0.000000e+00> : vector<30x8xf32>
    %55 = tpu.matmul %54, %6, %cst_48 {dimension_numbers = #tpu.dot_dimension_numbers<[1], [0], [0], [1], [0, 0, 1, 1], [], []>} : vector<30x8xf32>, vector<8x8xf32>, vector<30x8xf32> -> vector<30x8xf32>
    %56 = arith.addf %53, %55 : vector<30x8xf32>
    %57 = vector.broadcast %7 : vector<1x8xf32> to vector<30x8xf32>
    %58 = arith.addf %56, %57 : vector<30x8xf32>
    %59 = vector.extract_strided_slice %58 {offsets = [0, 0], sizes = [14, 8], strides = [1, 1]} : vector<30x8xf32> to vector<14x8xf32>
    %60 = vector.extract_strided_slice %58 {offsets = [16, 0], sizes = [14, 8], strides = [1, 1]} : vector<30x8xf32> to vector<14x8xf32>
    %c1_49 = arith.constant 1 : index
    %c0_50 = arith.constant 0 : index
    %61 = vector.load %arg3[%c1_49, %c0_50] : memref<32x8xf32, #tpu.memory_space<vmem>>, vector<14x8xf32>
    tpu.vector_store %arg3[%c1_49, %c0_50], %59 {strides = array<i32>} : memref<32x8xf32, #tpu.memory_space<vmem>>, vector<14x8xf32>,
    %c17_51 = arith.constant 17 : index
    %c0_52 = arith.constant 0 : index
    %62 = vector.load %arg3[%c17_51, %c0_52] : memref<32x8xf32, #tpu.memory_space<vmem>>, vector<14x8xf32>
    tpu.vector_store %arg3[%c17_51, %c0_52], %60 {strides = array<i32>} : memref<32x8xf32, #tpu.memory_space<vmem>>, vector<14x8xf32>,
    %c1_53 = arith.constant 1 : index
    %c0_54 = arith.constant 0 : index
    %63 = tpu.strided_load %arg3[%c1_53, %c0_54] {strides = array<i32: 2, 1>} : memref<32x8xf32, #tpu.memory_space<vmem>>, vector<7x8xf32>
    %c2_55 = arith.constant 2 : index
    %c0_56 = arith.constant 0 : index
    %64 = tpu.strided_load %arg3[%c2_55, %c0_56] {strides = array<i32: 2, 1>} : memref<32x8xf32, #tpu.memory_space<vmem>>, vector<7x8xf32>
    %c3 = arith.constant 3 : index
    %c0_57 = arith.constant 0 : index
    %65 = tpu.strided_load %arg3[%c3, %c0_57] {strides = array<i32: 2, 1>} : memref<32x8xf32, #tpu.memory_space<vmem>>, vector<7x8xf32>
    %66 = arith.maximumf %63, %64 : vector<7x8xf32>
    %67 = arith.maximumf %66, %65 : vector<7x8xf32>
    %c17_58 = arith.constant 17 : index
    %c0_59 = arith.constant 0 : index
    %68 = tpu.strided_load %arg3[%c17_58, %c0_59] {strides = array<i32: 2, 1>} : memref<32x8xf32, #tpu.memory_space<vmem>>, vector<7x8xf32>
    %c18 = arith.constant 18 : index
    %c0_60 = arith.constant 0 : index
    %69 = tpu.strided_load %arg3[%c18, %c0_60] {strides = array<i32: 2, 1>} : memref<32x8xf32, #tpu.memory_space<vmem>>, vector<7x8xf32>
    %c19 = arith.constant 19 : index
    %c0_61 = arith.constant 0 : index
    %70 = tpu.strided_load %arg3[%c19, %c0_61] {strides = array<i32: 2, 1>} : memref<32x8xf32, #tpu.memory_space<vmem>>, vector<7x8xf32>
    %71 = arith.maximumf %68, %69 : vector<7x8xf32>
    %72 = arith.maximumf %71, %70 : vector<7x8xf32>
    %cst_62 = arith.constant 0.000000e+00 : f32
    %73 = vector.broadcast %cst_62 : f32 to vector<7x8xf32>
    %74 = arith.maximumf %67, %73 : vector<7x8xf32>
    %cst_63 = arith.constant 0.000000e+00 : f32
    %75 = vector.broadcast %cst_63 : f32 to vector<7x8xf32>
    %76 = arith.maximumf %72, %75 : vector<7x8xf32>
    %c8 = arith.constant 8 : index
    %c0_64 = arith.constant 0 : index
    %77 = vector.load %arg3[%c8, %c0_64] : memref<32x8xf32, #tpu.memory_space<vmem>>, vector<1x8xf32>
    tpu.vector_store %arg3[%c8, %c0_64], %10 {strides = array<i32>} : memref<32x8xf32, #tpu.memory_space<vmem>>, vector<1x8xf32>,
    %c24 = arith.constant 24 : index
    %c0_65 = arith.constant 0 : index
    %78 = vector.load %arg3[%c24, %c0_65] : memref<32x8xf32, #tpu.memory_space<vmem>>, vector<1x8xf32>
    tpu.vector_store %arg3[%c24, %c0_65], %10 {strides = array<i32>} : memref<32x8xf32, #tpu.memory_space<vmem>>, vector<1x8xf32>,
    %c1_66 = arith.constant 1 : index
    %c0_67 = arith.constant 0 : index
    %79 = vector.load %arg3[%c1_66, %c0_67] : memref<32x8xf32, #tpu.memory_space<vmem>>, vector<7x8xf32>
    tpu.vector_store %arg3[%c1_66, %c0_67], %74 {strides = array<i32>} : memref<32x8xf32, #tpu.memory_space<vmem>>, vector<7x8xf32>,
    %c17_68 = arith.constant 17 : index
    %c0_69 = arith.constant 0 : index
    %80 = vector.load %arg3[%c17_68, %c0_69] : memref<32x8xf32, #tpu.memory_space<vmem>>, vector<7x8xf32>
    tpu.vector_store %arg3[%c17_68, %c0_69], %76 {strides = array<i32>} : memref<32x8xf32, #tpu.memory_space<vmem>>, vector<7x8xf32>,
    %c0_70 = arith.constant 0 : index
    %c0_71 = arith.constant 0 : index
    %81 = vector.load %arg3[%c0_70, %c0_71] : memref<32x8xf32, #tpu.memory_space<vmem>>, vector<23x8xf32>
    %cst_72 = arith.constant dense<0.000000e+00> : vector<23x8xf32>
    %82 = tpu.matmul %81, %4, %cst_72 {dimension_numbers = #tpu.dot_dimension_numbers<[1], [0], [0], [1], [0, 0, 1, 1], [], []>} : vector<23x8xf32>, vector<8x8xf32>, vector<23x8xf32> -> vector<23x8xf32>
    %c1_73 = arith.constant 1 : index
    %c0_74 = arith.constant 0 : index
    %83 = vector.load %arg3[%c1_73, %c0_74] : memref<32x8xf32, #tpu.memory_space<vmem>>, vector<23x8xf32>
    %cst_75 = arith.constant dense<0.000000e+00> : vector<23x8xf32>
    %84 = tpu.matmul %83, %5, %cst_75 {dimension_numbers = #tpu.dot_dimension_numbers<[1], [0], [0], [1], [0, 0, 1, 1], [], []>} : vector<23x8xf32>, vector<8x8xf32>, vector<23x8xf32> -> vector<23x8xf32>
    %85 = arith.addf %82, %84 : vector<23x8xf32>
    %c2_76 = arith.constant 2 : index
    %c0_77 = arith.constant 0 : index
    %86 = vector.load %arg3[%c2_76, %c0_77] : memref<32x8xf32, #tpu.memory_space<vmem>>, vector<23x8xf32>
    %cst_78 = arith.constant dense<0.000000e+00> : vector<23x8xf32>
    %87 = tpu.matmul %86, %6, %cst_78 {dimension_numbers = #tpu.dot_dimension_numbers<[1], [0], [0], [1], [0, 0, 1, 1], [], []>} : vector<23x8xf32>, vector<8x8xf32>, vector<23x8xf32> -> vector<23x8xf32>
    %88 = arith.addf %85, %87 : vector<23x8xf32>
    %89 = vector.broadcast %7 : vector<1x8xf32> to vector<23x8xf32>
    %90 = arith.addf %88, %89 : vector<23x8xf32>
    %91 = vector.extract_strided_slice %90 {offsets = [0, 0], sizes = [7, 8], strides = [1, 1]} : vector<23x8xf32> to vector<7x8xf32>
    %92 = vector.extract_strided_slice %90 {offsets = [16, 0], sizes = [7, 8], strides = [1, 1]} : vector<23x8xf32> to vector<7x8xf32>
    %cst_79 = arith.constant 0.000000e+00 : f32
    %93 = vector.broadcast %cst_79 : f32 to vector<7x8xf32>
    %94 = arith.maximumf %91, %93 : vector<7x8xf32>
    %cst_80 = arith.constant 0.000000e+00 : f32
    %95 = vector.broadcast %cst_80 : f32 to vector<7x8xf32>
    %96 = arith.maximumf %92, %95 : vector<7x8xf32>
    %c1_81 = arith.constant 1 : index
    %c0_82 = arith.constant 0 : index
    %97 = vector.load %arg3[%c1_81, %c0_82] : memref<32x8xf32, #tpu.memory_space<vmem>>, vector<7x8xf32>
    tpu.vector_store %arg3[%c1_81, %c0_82], %94 {strides = array<i32>} : memref<32x8xf32, #tpu.memory_space<vmem>>, vector<7x8xf32>,
    %c17_83 = arith.constant 17 : index
    %c0_84 = arith.constant 0 : index
    %98 = vector.load %arg3[%c17_83, %c0_84] : memref<32x8xf32, #tpu.memory_space<vmem>>, vector<7x8xf32>
    tpu.vector_store %arg3[%c17_83, %c0_84], %96 {strides = array<i32>} : memref<32x8xf32, #tpu.memory_space<vmem>>, vector<7x8xf32>,
    %c0_85 = arith.constant 0 : index
    %c0_86 = arith.constant 0 : index
    %99 = vector.load %arg3[%c0_85, %c0_86] : memref<32x8xf32, #tpu.memory_space<vmem>>, vector<23x8xf32>
    %cst_87 = arith.constant dense<0.000000e+00> : vector<23x8xf32>
    %100 = tpu.matmul %99, %4, %cst_87 {dimension_numbers = #tpu.dot_dimension_numbers<[1], [0], [0], [1], [0, 0, 1, 1], [], []>} : vector<23x8xf32>, vector<8x8xf32>, vector<23x8xf32> -> vector<23x8xf32>
    %c1_88 = arith.constant 1 : index
    %c0_89 = arith.constant 0 : index
    %101 = vector.load %arg3[%c1_88, %c0_89] : memref<32x8xf32, #tpu.memory_space<vmem>>, vector<23x8xf32>
    %cst_90 = arith.constant dense<0.000000e+00> : vector<23x8xf32>
    %102 = tpu.matmul %101, %5, %cst_90 {dimension_numbers = #tpu.dot_dimension_numbers<[1], [0], [0], [1], [0, 0, 1, 1], [], []>} : vector<23x8xf32>, vector<8x8xf32>, vector<23x8xf32> -> vector<23x8xf32>
    %103 = arith.addf %100, %102 : vector<23x8xf32>
    %c2_91 = arith.constant 2 : index
    %c0_92 = arith.constant 0 : index
    %104 = vector.load %arg3[%c2_91, %c0_92] : memref<32x8xf32, #tpu.memory_space<vmem>>, vector<23x8xf32>
    %cst_93 = arith.constant dense<0.000000e+00> : vector<23x8xf32>
    %105 = tpu.matmul %104, %6, %cst_93 {dimension_numbers = #tpu.dot_dimension_numbers<[1], [0], [0], [1], [0, 0, 1, 1], [], []>} : vector<23x8xf32>, vector<8x8xf32>, vector<23x8xf32> -> vector<23x8xf32>
    %106 = arith.addf %103, %105 : vector<23x8xf32>
    %107 = vector.broadcast %7 : vector<1x8xf32> to vector<23x8xf32>
    %108 = arith.addf %106, %107 : vector<23x8xf32>
    %109 = vector.extract_strided_slice %108 {offsets = [0, 0], sizes = [7, 8], strides = [1, 1]} : vector<23x8xf32> to vector<7x8xf32>
    %110 = vector.extract_strided_slice %108 {offsets = [16, 0], sizes = [7, 8], strides = [1, 1]} : vector<23x8xf32> to vector<7x8xf32>
    %111 = arith.addf %109, %67 : vector<7x8xf32>
    %112 = arith.addf %110, %72 : vector<7x8xf32>
    %c1_94 = arith.constant 1 : index
    %c0_95 = arith.constant 0 : index
    %113 = vector.load %arg3[%c1_94, %c0_95] : memref<32x8xf32, #tpu.memory_space<vmem>>, vector<7x8xf32>
    tpu.vector_store %arg3[%c1_94, %c0_95], %111 {strides = array<i32>} : memref<32x8xf32, #tpu.memory_space<vmem>>, vector<7x8xf32>,
    %c17_96 = arith.constant 17 : index
    %c0_97 = arith.constant 0 : index
    %114 = vector.load %arg3[%c17_96, %c0_97] : memref<32x8xf32, #tpu.memory_space<vmem>>, vector<7x8xf32>
    tpu.vector_store %arg3[%c17_96, %c0_97], %112 {strides = array<i32>} : memref<32x8xf32, #tpu.memory_space<vmem>>, vector<7x8xf32>,
    %c1_98 = arith.constant 1 : index
    %c0_99 = arith.constant 0 : index
    %115 = tpu.strided_load %arg3[%c1_98, %c0_99] {strides = array<i32: 2, 1>} : memref<32x8xf32, #tpu.memory_space<vmem>>, vector<3x8xf32>
    %c2_100 = arith.constant 2 : index
    %c0_101 = arith.constant 0 : index
    %116 = tpu.strided_load %arg3[%c2_100, %c0_101] {strides = array<i32: 2, 1>} : memref<32x8xf32, #tpu.memory_space<vmem>>, vector<3x8xf32>
    %c3_102 = arith.constant 3 : index
    %c0_103 = arith.constant 0 : index
    %117 = tpu.strided_load %arg3[%c3_102, %c0_103] {strides = array<i32: 2, 1>} : memref<32x8xf32, #tpu.memory_space<vmem>>, vector<3x8xf32>
    %118 = arith.maximumf %115, %116 : vector<3x8xf32>
    %119 = arith.maximumf %118, %117 : vector<3x8xf32>
    %c17_104 = arith.constant 17 : index
    %c0_105 = arith.constant 0 : index
    %120 = tpu.strided_load %arg3[%c17_104, %c0_105] {strides = array<i32: 2, 1>} : memref<32x8xf32, #tpu.memory_space<vmem>>, vector<3x8xf32>
    %c18_106 = arith.constant 18 : index
    %c0_107 = arith.constant 0 : index
    %121 = tpu.strided_load %arg3[%c18_106, %c0_107] {strides = array<i32: 2, 1>} : memref<32x8xf32, #tpu.memory_space<vmem>>, vector<3x8xf32>
    %c19_108 = arith.constant 19 : index
    %c0_109 = arith.constant 0 : index
    %122 = tpu.strided_load %arg3[%c19_108, %c0_109] {strides = array<i32: 2, 1>} : memref<32x8xf32, #tpu.memory_space<vmem>>, vector<3x8xf32>
    %123 = arith.maximumf %120, %121 : vector<3x8xf32>
    %124 = arith.maximumf %123, %122 : vector<3x8xf32>
    %cst_110 = arith.constant 0.000000e+00 : f32
    %125 = vector.broadcast %cst_110 : f32 to vector<3x8xf32>
    %126 = arith.maximumf %119, %125 : vector<3x8xf32>
    %cst_111 = arith.constant 0.000000e+00 : f32
    %127 = vector.broadcast %cst_111 : f32 to vector<3x8xf32>
    %128 = arith.maximumf %124, %127 : vector<3x8xf32>
    %c4 = arith.constant 4 : index
    %c0_112 = arith.constant 0 : index
    %129 = vector.load %arg3[%c4, %c0_112] : memref<32x8xf32, #tpu.memory_space<vmem>>, vector<1x8xf32>
    tpu.vector_store %arg3[%c4, %c0_112], %10 {strides = array<i32>} : memref<32x8xf32, #tpu.memory_space<vmem>>, vector<1x8xf32>,
    %c20 = arith.constant 20 : index
    %c0_113 = arith.constant 0 : index
    %130 = vector.load %arg3[%c20, %c0_113] : memref<32x8xf32, #tpu.memory_space<vmem>>, vector<1x8xf32>
    tpu.vector_store %arg3[%c20, %c0_113], %10 {strides = array<i32>} : memref<32x8xf32, #tpu.memory_space<vmem>>, vector<1x8xf32>,
    %c1_114 = arith.constant 1 : index
    %c0_115 = arith.constant 0 : index
    %131 = vector.load %arg3[%c1_114, %c0_115] : memref<32x8xf32, #tpu.memory_space<vmem>>, vector<3x8xf32>
    tpu.vector_store %arg3[%c1_114, %c0_115], %126 {strides = array<i32>} : memref<32x8xf32, #tpu.memory_space<vmem>>, vector<3x8xf32>,
    %c17_116 = arith.constant 17 : index
    %c0_117 = arith.constant 0 : index
    %132 = vector.load %arg3[%c17_116, %c0_117] : memref<32x8xf32, #tpu.memory_space<vmem>>, vector<3x8xf32>
    tpu.vector_store %arg3[%c17_116, %c0_117], %128 {strides = array<i32>} : memref<32x8xf32, #tpu.memory_space<vmem>>, vector<3x8xf32>,
    %c0_118 = arith.constant 0 : index
    %c0_119 = arith.constant 0 : index
    %133 = vector.load %arg3[%c0_118, %c0_119] : memref<32x8xf32, #tpu.memory_space<vmem>>, vector<19x8xf32>
    %cst_120 = arith.constant dense<0.000000e+00> : vector<19x8xf32>
    %134 = tpu.matmul %133, %4, %cst_120 {dimension_numbers = #tpu.dot_dimension_numbers<[1], [0], [0], [1], [0, 0, 1, 1], [], []>} : vector<19x8xf32>, vector<8x8xf32>, vector<19x8xf32> -> vector<19x8xf32>
    %c1_121 = arith.constant 1 : index
    %c0_122 = arith.constant 0 : index
    %135 = vector.load %arg3[%c1_121, %c0_122] : memref<32x8xf32, #tpu.memory_space<vmem>>, vector<19x8xf32>
    %cst_123 = arith.constant dense<0.000000e+00> : vector<19x8xf32>
    %136 = tpu.matmul %135, %5, %cst_123 {dimension_numbers = #tpu.dot_dimension_numbers<[1], [0], [0], [1], [0, 0, 1, 1], [], []>} : vector<19x8xf32>, vector<8x8xf32>, vector<19x8xf32> -> vector<19x8xf32>
    %137 = arith.addf %134, %136 : vector<19x8xf32>
    %c2_124 = arith.constant 2 : index
    %c0_125 = arith.constant 0 : index
    %138 = vector.load %arg3[%c2_124, %c0_125] : memref<32x8xf32, #tpu.memory_space<vmem>>, vector<19x8xf32>
    %cst_126 = arith.constant dense<0.000000e+00> : vector<19x8xf32>
    %139 = tpu.matmul %138, %6, %cst_126 {dimension_numbers = #tpu.dot_dimension_numbers<[1], [0], [0], [1], [0, 0, 1, 1], [], []>} : vector<19x8xf32>, vector<8x8xf32>, vector<19x8xf32> -> vector<19x8xf32>
    %140 = arith.addf %137, %139 : vector<19x8xf32>
    %141 = vector.broadcast %7 : vector<1x8xf32> to vector<19x8xf32>
    %142 = arith.addf %140, %141 : vector<19x8xf32>
    %143 = vector.extract_strided_slice %142 {offsets = [0, 0], sizes = [3, 8], strides = [1, 1]} : vector<19x8xf32> to vector<3x8xf32>
    %144 = vector.extract_strided_slice %142 {offsets = [16, 0], sizes = [3, 8], strides = [1, 1]} : vector<19x8xf32> to vector<3x8xf32>
    %cst_127 = arith.constant 0.000000e+00 : f32
    %145 = vector.broadcast %cst_127 : f32 to vector<3x8xf32>
    %146 = arith.maximumf %143, %145 : vector<3x8xf32>
    %cst_128 = arith.constant 0.000000e+00 : f32
    %147 = vector.broadcast %cst_128 : f32 to vector<3x8xf32>
    %148 = arith.maximumf %144, %147 : vector<3x8xf32>
    %c1_129 = arith.constant 1 : index
    %c0_130 = arith.constant 0 : index
    %149 = vector.load %arg3[%c1_129, %c0_130] : memref<32x8xf32, #tpu.memory_space<vmem>>, vector<3x8xf32>
    tpu.vector_store %arg3[%c1_129, %c0_130], %146 {strides = array<i32>} : memref<32x8xf32, #tpu.memory_space<vmem>>, vector<3x8xf32>,
    %c17_131 = arith.constant 17 : index
    %c0_132 = arith.constant 0 : index
    %150 = vector.load %arg3[%c17_131, %c0_132] : memref<32x8xf32, #tpu.memory_space<vmem>>, vector<3x8xf32>
    tpu.vector_store %arg3[%c17_131, %c0_132], %148 {strides = array<i32>} : memref<32x8xf32, #tpu.memory_space<vmem>>, vector<3x8xf32>,
    %c0_133 = arith.constant 0 : index
    %c0_134 = arith.constant 0 : index
    %151 = vector.load %arg3[%c0_133, %c0_134] : memref<32x8xf32, #tpu.memory_space<vmem>>, vector<19x8xf32>
    %cst_135 = arith.constant dense<0.000000e+00> : vector<19x8xf32>
    %152 = tpu.matmul %151, %4, %cst_135 {dimension_numbers = #tpu.dot_dimension_numbers<[1], [0], [0], [1], [0, 0, 1, 1], [], []>} : vector<19x8xf32>, vector<8x8xf32>, vector<19x8xf32> -> vector<19x8xf32>
    %c1_136 = arith.constant 1 : index
    %c0_137 = arith.constant 0 : index
    %153 = vector.load %arg3[%c1_136, %c0_137] : memref<32x8xf32, #tpu.memory_space<vmem>>, vector<19x8xf32>
    %cst_138 = arith.constant dense<0.000000e+00> : vector<19x8xf32>
    %154 = tpu.matmul %153, %5, %cst_138 {dimension_numbers = #tpu.dot_dimension_numbers<[1], [0], [0], [1], [0, 0, 1, 1], [], []>} : vector<19x8xf32>, vector<8x8xf32>, vector<19x8xf32> -> vector<19x8xf32>
    %155 = arith.addf %152, %154 : vector<19x8xf32>
    %c2_139 = arith.constant 2 : index
    %c0_140 = arith.constant 0 : index
    %156 = vector.load %arg3[%c2_139, %c0_140] : memref<32x8xf32, #tpu.memory_space<vmem>>, vector<19x8xf32>
    %cst_141 = arith.constant dense<0.000000e+00> : vector<19x8xf32>
    %157 = tpu.matmul %156, %6, %cst_141 {dimension_numbers = #tpu.dot_dimension_numbers<[1], [0], [0], [1], [0, 0, 1, 1], [], []>} : vector<19x8xf32>, vector<8x8xf32>, vector<19x8xf32> -> vector<19x8xf32>
    %158 = arith.addf %155, %157 : vector<19x8xf32>
    %159 = vector.broadcast %7 : vector<1x8xf32> to vector<19x8xf32>
    %160 = arith.addf %158, %159 : vector<19x8xf32>
    %161 = vector.extract_strided_slice %160 {offsets = [0, 0], sizes = [3, 8], strides = [1, 1]} : vector<19x8xf32> to vector<3x8xf32>
    %162 = vector.extract_strided_slice %160 {offsets = [16, 0], sizes = [3, 8], strides = [1, 1]} : vector<19x8xf32> to vector<3x8xf32>
    %163 = arith.addf %161, %119 : vector<3x8xf32>
    %164 = arith.addf %162, %124 : vector<3x8xf32>
    %c1_142 = arith.constant 1 : index
    %c0_143 = arith.constant 0 : index
    %165 = vector.load %arg3[%c1_142, %c0_143] : memref<32x8xf32, #tpu.memory_space<vmem>>, vector<3x8xf32>
    tpu.vector_store %arg3[%c1_142, %c0_143], %163 {strides = array<i32>} : memref<32x8xf32, #tpu.memory_space<vmem>>, vector<3x8xf32>,
    %c17_144 = arith.constant 17 : index
    %c0_145 = arith.constant 0 : index
    %166 = vector.load %arg3[%c17_144, %c0_145] : memref<32x8xf32, #tpu.memory_space<vmem>>, vector<3x8xf32>
    tpu.vector_store %arg3[%c17_144, %c0_145], %164 {strides = array<i32>} : memref<32x8xf32, #tpu.memory_space<vmem>>, vector<3x8xf32>,
    %c1_146 = arith.constant 1 : index
    %c0_147 = arith.constant 0 : index
    %167 = tpu.strided_load %arg3[%c1_146, %c0_147] {strides = array<i32: 2, 1>} : memref<32x8xf32, #tpu.memory_space<vmem>>, vector<1x8xf32>
    %c2_148 = arith.constant 2 : index
    %c0_149 = arith.constant 0 : index
    %168 = tpu.strided_load %arg3[%c2_148, %c0_149] {strides = array<i32: 2, 1>} : memref<32x8xf32, #tpu.memory_space<vmem>>, vector<1x8xf32>
    %c3_150 = arith.constant 3 : index
    %c0_151 = arith.constant 0 : index
    %169 = tpu.strided_load %arg3[%c3_150, %c0_151] {strides = array<i32: 2, 1>} : memref<32x8xf32, #tpu.memory_space<vmem>>, vector<1x8xf32>
    %170 = arith.maximumf %167, %168 : vector<1x8xf32>
    %171 = arith.maximumf %170, %169 : vector<1x8xf32>
    %c17_152 = arith.constant 17 : index
    %c0_153 = arith.constant 0 : index
    %172 = tpu.strided_load %arg3[%c17_152, %c0_153] {strides = array<i32: 2, 1>} : memref<32x8xf32, #tpu.memory_space<vmem>>, vector<1x8xf32>
    %c18_154 = arith.constant 18 : index
    %c0_155 = arith.constant 0 : index
    %173 = tpu.strided_load %arg3[%c18_154, %c0_155] {strides = array<i32: 2, 1>} : memref<32x8xf32, #tpu.memory_space<vmem>>, vector<1x8xf32>
    %c19_156 = arith.constant 19 : index
    %c0_157 = arith.constant 0 : index
    %174 = tpu.strided_load %arg3[%c19_156, %c0_157] {strides = array<i32: 2, 1>} : memref<32x8xf32, #tpu.memory_space<vmem>>, vector<1x8xf32>
    %175 = arith.maximumf %172, %173 : vector<1x8xf32>
    %176 = arith.maximumf %175, %174 : vector<1x8xf32>
    %cst_158 = arith.constant 0.000000e+00 : f32
    %177 = vector.broadcast %cst_158 : f32 to vector<1x8xf32>
    %178 = arith.maximumf %171, %177 : vector<1x8xf32>
    %cst_159 = arith.constant 0.000000e+00 : f32
    %179 = vector.broadcast %cst_159 : f32 to vector<1x8xf32>
    %180 = arith.maximumf %176, %179 : vector<1x8xf32>
    %c2_160 = arith.constant 2 : index
    %c0_161 = arith.constant 0 : index
    %181 = vector.load %arg3[%c2_160, %c0_161] : memref<32x8xf32, #tpu.memory_space<vmem>>, vector<1x8xf32>
    tpu.vector_store %arg3[%c2_160, %c0_161], %10 {strides = array<i32>} : memref<32x8xf32, #tpu.memory_space<vmem>>, vector<1x8xf32>,
    %c18_162 = arith.constant 18 : index
    %c0_163 = arith.constant 0 : index
    %182 = vector.load %arg3[%c18_162, %c0_163] : memref<32x8xf32, #tpu.memory_space<vmem>>, vector<1x8xf32>
    tpu.vector_store %arg3[%c18_162, %c0_163], %10 {strides = array<i32>} : memref<32x8xf32, #tpu.memory_space<vmem>>, vector<1x8xf32>,
    %c1_164 = arith.constant 1 : index
    %c0_165 = arith.constant 0 : index
    %183 = vector.load %arg3[%c1_164, %c0_165] : memref<32x8xf32, #tpu.memory_space<vmem>>, vector<1x8xf32>
    tpu.vector_store %arg3[%c1_164, %c0_165], %178 {strides = array<i32>} : memref<32x8xf32, #tpu.memory_space<vmem>>, vector<1x8xf32>,
    %c17_166 = arith.constant 17 : index
    %c0_167 = arith.constant 0 : index
    %184 = vector.load %arg3[%c17_166, %c0_167] : memref<32x8xf32, #tpu.memory_space<vmem>>, vector<1x8xf32>
    tpu.vector_store %arg3[%c17_166, %c0_167], %180 {strides = array<i32>} : memref<32x8xf32, #tpu.memory_space<vmem>>, vector<1x8xf32>,
    %c0_168 = arith.constant 0 : index
    %c0_169 = arith.constant 0 : index
    %185 = vector.load %arg3[%c0_168, %c0_169] : memref<32x8xf32, #tpu.memory_space<vmem>>, vector<17x8xf32>
    %cst_170 = arith.constant dense<0.000000e+00> : vector<17x8xf32>
    %186 = tpu.matmul %185, %4, %cst_170 {dimension_numbers = #tpu.dot_dimension_numbers<[1], [0], [0], [1], [0, 0, 1, 1], [], []>} : vector<17x8xf32>, vector<8x8xf32>, vector<17x8xf32> -> vector<17x8xf32>
    %c1_171 = arith.constant 1 : index
    %c0_172 = arith.constant 0 : index
    %187 = vector.load %arg3[%c1_171, %c0_172] : memref<32x8xf32, #tpu.memory_space<vmem>>, vector<17x8xf32>
    %cst_173 = arith.constant dense<0.000000e+00> : vector<17x8xf32>
    %188 = tpu.matmul %187, %5, %cst_173 {dimension_numbers = #tpu.dot_dimension_numbers<[1], [0], [0], [1], [0, 0, 1, 1], [], []>} : vector<17x8xf32>, vector<8x8xf32>, vector<17x8xf32> -> vector<17x8xf32>
    %189 = arith.addf %186, %188 : vector<17x8xf32>
    %c2_174 = arith.constant 2 : index
    %c0_175 = arith.constant 0 : index
    %190 = vector.load %arg3[%c2_174, %c0_175] : memref<32x8xf32, #tpu.memory_space<vmem>>, vector<17x8xf32>
    %cst_176 = arith.constant dense<0.000000e+00> : vector<17x8xf32>
    %191 = tpu.matmul %190, %6, %cst_176 {dimension_numbers = #tpu.dot_dimension_numbers<[1], [0], [0], [1], [0, 0, 1, 1], [], []>} : vector<17x8xf32>, vector<8x8xf32>, vector<17x8xf32> -> vector<17x8xf32>
    %192 = arith.addf %189, %191 : vector<17x8xf32>
    %193 = vector.broadcast %7 : vector<1x8xf32> to vector<17x8xf32>
    %194 = arith.addf %192, %193 : vector<17x8xf32>
    %195 = vector.extract_strided_slice %194 {offsets = [0, 0], sizes = [1, 8], strides = [1, 1]} : vector<17x8xf32> to vector<1x8xf32>
    %196 = vector.extract_strided_slice %194 {offsets = [16, 0], sizes = [1, 8], strides = [1, 1]} : vector<17x8xf32> to vector<1x8xf32>
    %cst_177 = arith.constant 0.000000e+00 : f32
    %197 = vector.broadcast %cst_177 : f32 to vector<1x8xf32>
    %198 = arith.maximumf %195, %197 : vector<1x8xf32>
    %cst_178 = arith.constant 0.000000e+00 : f32
    %199 = vector.broadcast %cst_178 : f32 to vector<1x8xf32>
    %200 = arith.maximumf %196, %199 : vector<1x8xf32>
    %c1_179 = arith.constant 1 : index
    %c0_180 = arith.constant 0 : index
    %201 = vector.load %arg3[%c1_179, %c0_180] : memref<32x8xf32, #tpu.memory_space<vmem>>, vector<1x8xf32>
    tpu.vector_store %arg3[%c1_179, %c0_180], %198 {strides = array<i32>} : memref<32x8xf32, #tpu.memory_space<vmem>>, vector<1x8xf32>,
    %c17_181 = arith.constant 17 : index
    %c0_182 = arith.constant 0 : index
    %202 = vector.load %arg3[%c17_181, %c0_182] : memref<32x8xf32, #tpu.memory_space<vmem>>, vector<1x8xf32>
    tpu.vector_store %arg3[%c17_181, %c0_182], %200 {strides = array<i32>} : memref<32x8xf32, #tpu.memory_space<vmem>>, vector<1x8xf32>,
    %c0_183 = arith.constant 0 : index
    %c0_184 = arith.constant 0 : index
    %203 = vector.load %arg3[%c0_183, %c0_184] : memref<32x8xf32, #tpu.memory_space<vmem>>, vector<17x8xf32>
    %cst_185 = arith.constant dense<0.000000e+00> : vector<17x8xf32>
    %204 = tpu.matmul %203, %4, %cst_185 {dimension_numbers = #tpu.dot_dimension_numbers<[1], [0], [0], [1], [0, 0, 1, 1], [], []>} : vector<17x8xf32>, vector<8x8xf32>, vector<17x8xf32> -> vector<17x8xf32>
    %c1_186 = arith.constant 1 : index
    %c0_187 = arith.constant 0 : index
    %205 = vector.load %arg3[%c1_186, %c0_187] : memref<32x8xf32, #tpu.memory_space<vmem>>, vector<17x8xf32>
    %cst_188 = arith.constant dense<0.000000e+00> : vector<17x8xf32>
    %206 = tpu.matmul %205, %5, %cst_188 {dimension_numbers = #tpu.dot_dimension_numbers<[1], [0], [0], [1], [0, 0, 1, 1], [], []>} : vector<17x8xf32>, vector<8x8xf32>, vector<17x8xf32> -> vector<17x8xf32>
    %207 = arith.addf %204, %206 : vector<17x8xf32>
    %c2_189 = arith.constant 2 : index
    %c0_190 = arith.constant 0 : index
    %208 = vector.load %arg3[%c2_189, %c0_190] : memref<32x8xf32, #tpu.memory_space<vmem>>, vector<17x8xf32>
    %cst_191 = arith.constant dense<0.000000e+00> : vector<17x8xf32>
    %209 = tpu.matmul %208, %6, %cst_191 {dimension_numbers = #tpu.dot_dimension_numbers<[1], [0], [0], [1], [0, 0, 1, 1], [], []>} : vector<17x8xf32>, vector<8x8xf32>, vector<17x8xf32> -> vector<17x8xf32>
    %210 = arith.addf %207, %209 : vector<17x8xf32>
    %211 = vector.broadcast %7 : vector<1x8xf32> to vector<17x8xf32>
    %212 = arith.addf %210, %211 : vector<17x8xf32>
    %213 = vector.extract_strided_slice %212 {offsets = [0, 0], sizes = [1, 8], strides = [1, 1]} : vector<17x8xf32> to vector<1x8xf32>
    %214 = vector.extract_strided_slice %212 {offsets = [16, 0], sizes = [1, 8], strides = [1, 1]} : vector<17x8xf32> to vector<1x8xf32>
    %215 = arith.addf %213, %171 : vector<1x8xf32>
    %216 = arith.addf %214, %176 : vector<1x8xf32>
    %217 = tpu.concatenate %215, %216 in 0 : vector<1x8xf32>, vector<1x8xf32> -> vector<2x8xf32>
    %cst_192 = arith.constant dense<0.000000e+00> : vector<2x8xf32>
    %218 = tpu.matmul %217, %8, %cst_192 {dimension_numbers = #tpu.dot_dimension_numbers<[1], [0], [0], [1], [0, 0, 1, 1], [], []>} : vector<2x8xf32>, vector<8x8xf32>, vector<2x8xf32> -> vector<2x8xf32>
    %219 = vector.broadcast %9 : vector<1x8xf32> to vector<2x8xf32>
    %220 = arith.addf %218, %219 : vector<2x8xf32>
    %221 = vector.extract_strided_slice %220 {offsets = [0, 0], sizes = [2, 4], strides = [1, 1]} : vector<2x8xf32> to vector<2x4xf32>
    %c0_193 = arith.constant 0 : index
    %c0_194 = arith.constant 0 : index
    %222 = vector.load %arg2[%c0_193, %c0_194] : memref<2x4xf32, #tpu.memory_space<vmem>>, vector<2x4xf32>
    tpu.vector_store %arg2[%c0_193, %c0_194], %221 {strides = array<i32>} : memref<2x4xf32, #tpu.memory_space<vmem>>, vector<2x4xf32>,
    return
  }
}

</mosaic_0001>

<bundles_post_ra>
// kernel: tpu_custom_call.1
= control target key start
LH: loop header
LB: loop body
LE: loop exit
PB: predicated region body
PF: predicated region fallthrough
CT: control target
= control target key end

     0   :  { %vm44_vm0 = vcmask 261120   ;;  %vm31_vm1 = vcmask 64512   ;;  %v3428_v6 = vmov 0.0   ;;  %s3917_s0 = inlined_call_operand.vmem [shape: f32[32,32], index: 0, kind: input, shape index: {}]   ;;  %s3918_s1 = inlined_call_operand.vmem [shape: f32[152,8], index: 1, kind: input, shape index: {}]   ;;  %s3919_s2 = inlined_call_operand.hbm [shape: f32[2,4], index: 2, kind: output, shape index: {}]  }
   0x1   :  { %v16_v0 = vld [vmem:[%s3918_s1 + $0x20] sm:$0xff]  ;;  %v17_v1 = vld [vmem:[%s3918_s1 + $0x28] sm:$0xff]  ;;  %v18_v2 = vld [vmem:[%s3918_s1 + $0x30] sm:$0xff]  ;;  %33 = vst.msk [vmem:[#allocation2 + $0x8] sm:$0xff] %vm31_vm1, %v3428_v6 }
   0x2   :  { %v3353_v3 = vpack.c.bf16 %v17_v1, %v16_v0  ;;  %v19_v4 = vld [vmem:[%s3918_s1 + $0x38] sm:$0xff]  ;;  %v40_v5 = vld [vmem:[%s3917_s0 + $0x1] sm:$0xff]  ;;  %32 = vst.msk [vmem:[#allocation2] sm:$0xff] %vm31_vm1, %v3428_v6  ;;  %34 = vst.msk [vmem:[#allocation2 + $0x10] sm:$0xff] %vm31_vm1, %v3428_v6 }
   0x3   :  { %35 = vst.msk [vmem:[#allocation2 + $0x18] sm:$0xff] %vm31_vm1, %v3428_v6  ;;  %v3357_v7 = vpack.c.bf16 %v19_v4, %v18_v2  ;;  %3068 = vmatprep.mubr.msk.f32.mxu0 %vm44_vm0, %v40_v5  ;;  %v12_v8 = vld [vmem:[%s3918_s1] sm:$0xff]  ;;  %v13_v9 = vld [vmem:[%s3918_s1 + $0x8] sm:$0xff]  ;;  %v14_v11 = vld [vmem:[%s3918_s1 + $0x10] sm:$0xff] }
   0x4   :  { %3354 = vmatprep.subr.bf16.mxu0 %v3353_v3  ;;  %v3361_v10 = vpack.c.bf16 %v13_v9, %v12_v8  ;;  %v15_v12 = vld [vmem:[%s3918_s1 + $0x18] sm:$0xff]  ;;  %v41_v13 = vld [vmem:[%s3917_s0 + $0x9] sm:$0xff] }
   0x5   :  { %3356 = vmatpush3.bf16.msra.mxu0 %v3353_v3 }
   0x6   :  { %3358 = vmatprep.subr.bf16.mxu0 %v3357_v7 }
   0x9   :  { %3360 = vmatpush3.bf16.msra.mxu0 %v3357_v7 }
   0xa   :  { %7 = vsyncpa [#allocation4], 0  ;;  %3362 = vmatprep.subr.bf16.mxu0 %v3361_v10  ;;  %v42_v14 = vld [vmem:[%s3917_s0 + $0x11] sm:$0xff]  ;;  %v3365_v15 = vpack.c.bf16 %v15_v12, %v14_v11  ;;  %v20_v16 = vld [vmem:[%s3918_s1 + $0x40] sm:$0xff]  ;;  %vm357_vm2 = vcmask 62464   ;;  %vm3429_vm3 = vmmov 0  }
   0xb   :  { %v21_v17 = vld [vmem:[%s3918_s1 + $0x48] sm:$0xff]  ;;  %v43_v18 = vld [vmem:[%s3917_s0 + $0x19] sm:$0x3f]  ;;  %v36_v19 = vld [vmem:[%s3917_s0] sm:$0xff]  ;;  %vm1017_vm4 = vcmask 57344   ;;  %vm1020_vm5 = vcmask 63488  }
   0xc   :  { %3069 = vmatmul.mubr.msk.f32.vlgmr.msra.gmra.mrb[0].mxu0 %vm44_vm0, %v41_v13  ;;  %v3369_v20 = vpack.c.bf16 %v21_v17, %v20_v16  ;;  %v22_v21 = vld [vmem:[%s3918_s1 + $0x50] sm:$0xff]  ;;  %v23_v22 = vld [vmem:[%s3918_s1 + $0x58] sm:$0xff]  ;;  %v37_v23 = vld [vmem:[%s3917_s0 + $0x8] sm:$0xff]  ;;  %vm1599_vm6 = vcmask 59392   ;;  %vm2743_vm7 = vcmask 1040384   ;;  %s3430_s14 = smov [#allocation3]  }
   0xd   :  { %3364 = vmatpush3.bf16.msra.mxu0 %v3361_v10  ;;  %3071 = vmatprep.mubr.msk.f32.mxu0 %vm44_vm0, %v42_v14  ;;  %v38_v24 = vld [vmem:[%s3917_s0 + $0x10] sm:$0xff]  ;;  %v3373_v25 = vpack.c.bf16 %v23_v22, %v22_v21  ;;  %v39_v26 = vld [vmem:[%s3917_s0 + $0x18] sm:$0x3f]  ;;  %v239_v27 = vld [vmem:[%s3917_s0 + $0x2] sm:$0xff]  ;;  %s2830_s15 = sshll.u32 %s3430_s14, 4  ;;  %vm2822_vm8 = vcmask 25600   ;;  %s2831_s15 = int_to_ptr.vmem [resolvable:$true] %s2830_s15 }
   0xe   :  { %3366 = vmatprep.subr.bf16.mxu0 %v3365_v15  ;;  %v240_v28 = vld [vmem:[%s3917_s0 + $0xa] sm:$0xff]  ;;  %v241_v29 = vld [vmem:[%s3917_s0 + $0x12] sm:$0xff]  ;;  %v242_v30 = vld [vmem:[%s3917_s0 + $0x1a] sm:$0x3f]  ;;  %s3404_s16 = scalar_lea.vmem %s2831_s15, 32  ;;  %p3409_p1 = scmp.lt.s32.totalorder %s2831_s15, %s2831_s15 }
   0xf   :  { %v3542_v31 = vld [vmem:[%s3918_s1 + $0x70] sm:$0xff]  ;;  %v3551_v32 = vld [vmem:[%s3918_s1 + $0x68] sm:$0xff]  ;;  %v2850_v33 = vld [vmem:[%s3918_s1 + $0x60] ss:$0 sm:$0xff]  ;;  %p3405_p0 = scmp.ne.s32.totalorder %s2831_s15, %s3404_s16  ;;  %p3410_p2 = scmp.lt.s32.totalorder %s3404_s16, %s3404_s16 }
  0x10   :  { %3072 = vmatmul.mubr.msk.f32.gmra.mrb[2].mxu0 %vm44_vm0, %v43_v18  ;;  %3102 = vmatprep.subr.mxu1 %v3542_v31  ;;  %v3565_v48 = vld [vmem:[%s3918_s1 + $0x78] sm:$0xff]  ;;  %v3587_v59 = vld [vmem:[%s3918_s1 + $0x80] ss:$0 sm:$0xff] }
  0x11   :  { %3368 = vmatpush3.bf16.msra.mxu0 %v3365_v15  ;;  %3082 = vmatprep.mubr.msk.f32.mxu0 %vm44_vm0, %v36_v19  ;;  %p3411_p3 = por %p3410_p2, %p3409_p1 }
  0x12   :  { %3370 = vmatprep.subr.bf16.mxu0 %v3369_v20  ;;  %3103 = vmatpush3.msra.mxu1 %v3542_v31 }
  0x13   :  { %3110 = vmatprep.subr.mxu1 %v3551_v32  ;;  %p3412_p4 = pnand %p3411_p3, %p3405_p0 }
  0x14   :  { %3083 = vmatmul.mubr.msk.f32.vlgmr.msra.gmra.mrb[0].mxu0 %vm44_vm0, %v37_v23 }
  0x15   :  { %3372 = vmatpush3.bf16.msra.mxu0 %v3369_v20  ;;  %3085 = vmatprep.mubr.msk.f32.mxu0 %vm44_vm0, %v38_v24 }
  0x16   :  { %3374 = vmatprep.subr.bf16.mxu0 %v3373_v25 }
  0x18   :  { %3086 = vmatmul.mubr.msk.f32.gmra.mrb[2].mxu0 %vm44_vm0, %v39_v26 }
  0x19   :  { %3376 = vmatpush3.bf16.msra.mxu0 %v3373_v25  ;;  %3096 = vmatprep.mubr.msk.f32.mxu0 %vm44_vm0, %v239_v27 }
  0x1a   :  { %3150 = vmatprep.subr.mxu0 %v3428_v6 }
  0x1c   :  { %3097 = vmatmul.mubr.msk.f32.vlgmr.msra.gmra.mrb[0].mxu0 %vm44_vm0, %v240_v28 }
  0x1d   :  { %3099 = vmatprep.mubr.msk.f32.mxu0 %vm44_vm0, %v241_v29  ;;  %3151 = vmatpush3.msra.mxu0 %v3542_v31 }
  0x1e   :  { %3161 = vmatprep.subr.mxu0 %v3428_v6 }
  0x20   :  { %3100 = vmatmul.mubr.msk.f32.gmra.mrb[2].mxu0 %vm44_vm0, %v242_v30 }
  0x21   :  { %3152 = vmatprep.mubr.msk.f32.mxu0 %vm3429_vm3, %v3428_v6 }
  0xef   :  { %v3098_v34 = vpop.f32.mrb[0].mxu0 }
  0xf0   :  { %v349_v35 = vadd.f32 %v3098_v34, %v2850_v33  ;;  %v321_v36 = vpop.f32.mrb[1].mxu0 }
  0xf1   :  { %v348_v37 = vadd.f32 %v2850_v33, %v321_v36 }
  0xf2   :  { %v353_v38 = vmax.f32 %v349_v35, 0.0 }
  0xf3   :  { %v352_v39 = vmax.f32 %v348_v37, 0.0  ;;  %v3101_v40 = vpop.f32.mrb[2].mxu0 }
  0xf4   :  { %358 = vst.msk [vmem:[#allocation2 + $0x9] sm:$0x3f] %vm357_vm2, %v353_v38  ;;  %v351_v41 = vadd.f32 %v3101_v40, %v2850_v33  ;;  %v331_v42 = vpop.f32.mrb[3].mxu0 }
  0xf5   :  { %356 = vst.msk [vmem:[#allocation2 + $0x1] sm:$0xff] %vm31_vm1, %v352_v39  ;;  %v350_v43 = vadd.f32 %v2850_v33, %v331_v42 }
  0xf6   :  { %v355_v44 = vmax.f32 %v351_v41, 0.0 }
  0xf7   :  { %v354_v45 = vmax.f32 %v350_v43, 0.0 }
  0xf8   :  { %360 = vst.msk [vmem:[#allocation2 + $0x19] sm:$0x3f] %vm357_vm2, %v355_v44 }
  0xf9   :  { %359 = vst.msk [vmem:[#allocation2 + $0x11] sm:$0xff] %vm31_vm1, %v354_v45 }
  0xfb   :  { %v366_v47 = vld [vmem:[#allocation2 + $0x9] sm:$0xff] }
  0xfc   :  { %v365_v46 = vld [vmem:[#allocation2 + $0x1] sm:$0xff] }
  0xfd   :  { %3104 = vmatprep.mubr.msk.f32.mxu1 %vm31_vm1, %v365_v46  ;;  %v361_v51 = vld [vmem:[#allocation2] sm:$0xff]  ;;  %v362_v52 = vld [vmem:[#allocation2 + $0x8] sm:$0xff] }
  0xfe   :  { %3105 = vmatmul.mubr.msk.f32.vlgmr.msra.gmra.mrb[0].mxu1 %vm31_vm1, %v366_v47  ;;  %v563_v55 = vld [vmem:[#allocation2 + $0x2] sm:$0xff] }
  0xff   :  { %3111 = vmatpush3.msra.mxu1 %v3551_v32  ;;  %v368_v50 = vld [vmem:[#allocation2 + $0x19] sm:$0x3f] }
 0x100   :  { %3118 = vmatprep.subr.mxu1 %v3565_v48  ;;  %v367_v49 = vld [vmem:[#allocation2 + $0x11] sm:$0xff]  ;;  %v566_v58 = vld [vmem:[#allocation2 + $0x1a] sm:$0x3f] }
 0x101   :  { %3107 = vmatprep.mubr.msk.f32.mxu1 %vm31_vm1, %v367_v49  ;;  %v363_v53 = vld [vmem:[#allocation2 + $0x10] sm:$0xff]  ;;  %v364_v54 = vld [vmem:[#allocation2 + $0x18] sm:$0x3f] }
 0x102   :  { %3108 = vmatmul.mubr.msk.f32.gmra.mrb[2].mxu1 %vm31_vm1, %v368_v50  ;;  %v564_v56 = vld [vmem:[#allocation2 + $0xa] sm:$0xff]  ;;  %v565_v57 = vld [vmem:[#allocation2 + $0x12] sm:$0xff] }
 0x103   :  { %3112 = vmatprep.mubr.msk.f32.mxu1 %vm31_vm1, %v361_v51 }
 0x106   :  { %3113 = vmatmul.mubr.msk.f32.vlgmr.msra.gmra.mrb[0].mxu1 %vm31_vm1, %v362_v52 }
 0x107   :  { %3115 = vmatprep.mubr.msk.f32.mxu1 %vm31_vm1, %v363_v53  ;;  %3119 = vmatpush3.msra.mxu1 %v3565_v48 }
 0x108   :  { %3126 = vmatprep.subr.mxu1 %v3542_v31 }
 0x10a   :  { %3116 = vmatmul.mubr.msk.f32.gmra.mrb[2].mxu1 %vm31_vm1, %v364_v54 }
 0x10b   :  { %3120 = vmatprep.mubr.msk.f32.mxu1 %vm31_vm1, %v563_v55 }
 0x10e   :  { %3121 = vmatmul.mubr.msk.f32.vlgmr.msra.gmra.mrb[0].mxu1 %vm31_vm1, %v564_v56 }
 0x10f   :  { %3123 = vmatprep.mubr.msk.f32.mxu1 %vm31_vm1, %v565_v57  ;;  %3127 = vmatpush3.msra.mxu1 %v3542_v31 }
 0x110   :  { %3134 = vmatprep.subr.mxu1 %v3551_v32 }
 0x112   :  { %3124 = vmatmul.mubr.msk.f32.gmra.mrb[2].mxu1 %vm31_vm1, %v566_v58 }
 0x1e1   :  { %v3122_v60 = vpop.f32.mrb[0].mxu1 }
 0x1e2   :  { %v673_v61 = vadd.f32 %v3122_v60, %v3587_v59  ;;  %v645_v62 = vpop.f32.mrb[1].mxu1 }
 0x1e3   :  { %v672_v63 = vadd.f32 %v3587_v59, %v645_v62 }
 0x1e4   :  { %v677_v0 = vmax.f32 %v673_v61, 0.0 }
 0x1e5   :  { %v676_v1 = vmax.f32 %v672_v63, 0.0  ;;  %v3125_v2 = vpop.f32.mrb[2].mxu1 }
 0x1e6   :  { %681 = vst.msk [vmem:[#allocation2 + $0x9] sm:$0x3f] %vm357_vm2, %v677_v0  ;;  %v675_v3 = vadd.f32 %v3125_v2, %v3587_v59  ;;  %v655_v4 = vpop.f32.mrb[3].mxu1 }
 0x1e7   :  { %680 = vst.msk [vmem:[#allocation2 + $0x1] sm:$0xff] %vm31_vm1, %v676_v1  ;;  %v674_v5 = vadd.f32 %v3587_v59, %v655_v4 }
 0x1e8   :  { %v679_v7 = vmax.f32 %v675_v3, 0.0 }
 0x1e9   :  { %v678_v8 = vmax.f32 %v674_v5, 0.0 }
 0x1ea   :  { %683 = vst.msk [vmem:[#allocation2 + $0x19] sm:$0x3f] %vm357_vm2, %v679_v7 }
 0x1eb   :  { %682 = vst.msk [vmem:[#allocation2 + $0x11] sm:$0xff] %vm31_vm1, %v678_v8 }
 0x1ed   :  { %v689_v10 = vld [vmem:[#allocation2 + $0x9] sm:$0xff] }
 0x1ee   :  { %v688_v9 = vld [vmem:[#allocation2 + $0x1] sm:$0xff] }
 0x1ef   :  { %3128 = vmatprep.mubr.msk.f32.mxu1 %vm31_vm1, %v688_v9  ;;  %v684_v13 = vld [vmem:[#allocation2] sm:$0xff]  ;;  %v685_v14 = vld [vmem:[#allocation2 + $0x8] sm:$0xff] }
 0x1f0   :  { %3129 = vmatmul.mubr.msk.f32.vlgmr.msra.gmra.mrb[4].mxu1 %vm31_vm1, %v689_v10  ;;  %v886_v17 = vld [vmem:[#allocation2 + $0x2] sm:$0xff] }
 0x1f1   :  { %3135 = vmatpush3.msra.mxu1 %v3551_v32  ;;  %v691_v12 = vld [vmem:[#allocation2 + $0x19] sm:$0x3f] }
 0x1f2   :  { %v690_v11 = vld [vmem:[#allocation2 + $0x11] sm:$0xff]  ;;  %3142 = vmatprep.subr.mxu1 %v3565_v48  ;;  %v889_v20 = vld [vmem:[#allocation2 + $0x1a] sm:$0x3f] }
 0x1f3   :  { %3131 = vmatprep.mubr.msk.f32.mxu1 %vm31_vm1, %v690_v11  ;;  %v686_v15 = vld [vmem:[#allocation2 + $0x10] sm:$0xff]  ;;  %v687_v16 = vld [vmem:[#allocation2 + $0x18] sm:$0x3f] }
 0x1f4   :  { %3132 = vmatmul.mubr.msk.f32.gmra.mrb[6].mxu1 %vm31_vm1, %v691_v12  ;;  %v887_v18 = vld [vmem:[#allocation2 + $0xa] sm:$0xff]  ;;  %v888_v19 = vld [vmem:[#allocation2 + $0x12] sm:$0xff] }
 0x1f5   :  { %3136 = vmatprep.mubr.msk.f32.mxu1 %vm31_vm1, %v684_v13 }
 0x1f8   :  { %3137 = vmatmul.mubr.msk.f32.vlgmr.msra.gmra.mrb[4].mxu1 %vm31_vm1, %v685_v14 }
 0x1f9   :  { %3139 = vmatprep.mubr.msk.f32.mxu1 %vm31_vm1, %v686_v15  ;;  %3143 = vmatpush3.msra.mxu1 %v3565_v48 }
 0x1fa   :  { %3172 = vmatprep.subr.mxu1 %v3428_v6 }
 0x1fc   :  { %3140 = vmatmul.mubr.msk.f32.gmra.mrb[6].mxu1 %vm31_vm1, %v687_v16 }
 0x1fd   :  { %3144 = vmatprep.mubr.msk.f32.mxu1 %vm31_vm1, %v886_v17 }
 0x200   :  { %3145 = vmatmul.mubr.msk.f32.vlgmr.msra.gmra.mrb[4].mxu1 %vm31_vm1, %v887_v18 }
 0x201   :  { %3147 = vmatprep.mubr.msk.f32.mxu1 %vm31_vm1, %v888_v19  ;;  %3173 = vmatpush3.msra.mxu1 %v3565_v48 }
 0x202   :  { %3194 = vmatprep.subr.mxu1 %v3428_v6 }
 0x204   :  { %3148 = vmatmul.mubr.msk.f32.gmra.mrb[6].mxu1 %vm31_vm1, %v889_v20 }
 0x205   :  { %3174 = vmatprep.mubr.msk.f32.mxu1 %vm3429_vm3, %v3428_v6 }
 0x2d3   :  { %v3146_v21 = vpop.f32.mrb[4].mxu1 }
 0x2d4   :  { %v992_v22 = vadd.f32 %v3146_v21, %v3587_v59  ;;  %v968_v23 = vpop.f32.mrb[5].mxu1 }
 0x2d5   :  { %v991_v24 = vadd.f32 %v3587_v59, %v968_v23 }
 0x2d6   :  { %996 = vst.msk [vmem:[#allocation2 + $0x9] sm:$0x3f] %vm357_vm2, %v992_v22 }
 0x2d7   :  { %995 = vst.msk [vmem:[#allocation2 + $0x1] sm:$0xff] %vm31_vm1, %v991_v24  ;;  %v3149_v25 = vpop.f32.mrb[6].mxu1 }
 0x2d8   :  { %v994_v26 = vadd.f32 %v3149_v25, %v3587_v59  ;;  %v978_v27 = vpop.f32.mrb[7].mxu1 }
 0x2d9   :  { %v993_v28 = vadd.f32 %v3587_v59, %v978_v27 }
 0x2da   :  { %998 = vst.msk [vmem:[#allocation2 + $0x19] sm:$0x3f] %vm357_vm2, %v994_v26 }
 0x2db   :  { %997 = vst.msk [vmem:[#allocation2 + $0x11] sm:$0xff] %vm31_vm1, %v993_v28 }
 0x2dd   :  { %v3647_v45 = vld [vmem:[#allocation2 + $0x9] sm:$0xff] }
 0x2de   :  { %v1000_v29 = vld [vmem:[#allocation2 + $0x1] ss:$2 sm:$0x7f]  ;;  %v1002_v30 = vld [vmem:[#allocation2 + $0x2] ss:$2 sm:$0x7f] }
 0x2df   :  { %v1005_v33 = vmax.f32 %v1000_v29, %v1002_v30  ;;  %1018 = vst.msk [vmem:[#allocation2 + $0x8] sm:$0x1] %vm1017_vm4, %v3428_v6  ;;  %v1004_v34 = vld [vmem:[#allocation2 + $0x3] ss:$2 sm:$0x7f] }
 0x2e1   :  { %v3629_v35 = vmax.f32 %v1005_v33, %v1004_v34 }
 0x2e2   :  { %v1008_v36 = vld [vmem:[#allocation2 + $0x11] ss:$2 sm:$0x7f]  ;;  %v1010_v37 = vld [vmem:[#allocation2 + $0x12] ss:$2 sm:$0x7f] }
 0x2e3   :  { %v1015_v38 = vmax.f32 %v3629_v35, 0.0  ;;  %v1013_v39 = vmax.f32 %v1008_v36, %v1010_v37  ;;  %1019 = vst.msk [vmem:[#allocation2 + $0x18] sm:$0x1] %vm1017_vm4, %v3428_v6  ;;  %v1012_v40 = vld [vmem:[#allocation2 + $0x13] ss:$2 sm:$0x7f] }
 0x2e5   :  { %1021 = vst.msk [vmem:[#allocation2 + $0x1] sm:$0x7f] %vm1020_vm5, %v1015_v38  ;;  %v3635_v41 = vmax.f32 %v1013_v39, %v1012_v40 }
 0x2e6   :  { %v3669_v51 = vld [vmem:[#allocation2 + $0x8] sm:$0xff] }
 0x2e7   :  { %v1016_v42 = vmax.f32 %v3635_v41, 0.0 }
 0x2e9   :  { %1022 = vst.msk [vmem:[#allocation2 + $0x11] sm:$0x7f] %vm1020_vm5, %v1016_v42 }
 0x2ec   :  { %v1026_v43 = vld [vmem:[#allocation2 + $0x1] sm:$0xff] }
 0x2ed   :  { %v1205_v44 = vld [vmem:[#allocation2 + $0x2] sm:$0xff]  ;;  %3153 = vmatmul.mubr.msk.f32.vlgmr.msra.gmra.mrb[4].mxu0 %vm31_vm1, %v1026_v43 }
 0x2ee   :  { %3175 = vmatmul.mubr.msk.f32.vlgmr.msra.gmra.mrb[8].mxu1 %vm31_vm1, %v1205_v44  ;;  %3162 = vmatpush3.msra.mxu0 %v3551_v32  ;;  %v1023_v50 = vld [vmem:[#allocation2] sm:$0xff] }
 0x2ef   :  { %3155 = vmatprep.mubr.msk.f32.mxu0 %vm3429_vm3, %v3428_v6  ;;  %3177 = vmatprep.mubr.msk.f32.mxu1 %vm3429_vm3, %v3428_v6 }
 0x2f0   :  { %3183 = vmatprep.subr.mxu0 %v3428_v6  ;;  %v1206_v46 = vld [vmem:[#allocation2 + $0xa] sm:$0xff]  ;;  %3195 = vmatpush3.msra.mxu1 %v3551_v32  ;;  %v1207_v49 = vld [vmem:[#allocation2 + $0x12] sm:$0x7f] }
 0x2f1   :  { %3156 = vmatmul.mubr.msk.f32.gmra.mrb[6].mxu0 %vm31_vm1, %v3647_v45  ;;  %3216 = vmatprep.subr.mxu1 %v3428_v6  ;;  %v1028_v47 = vld [vmem:[#allocation2 + $0x11] sm:$0x7f] }
 0x2f2   :  { %3178 = vmatmul.mubr.msk.f32.gmra.mrb[10].mxu1 %vm31_vm1, %v1206_v46  ;;  %3158 = vmatprep.mubr.msk.f32.mxu0 %vm3429_vm3, %v3428_v6  ;;  %v1025_v52 = vld [vmem:[#allocation2 + $0x10] sm:$0x7f] }
 0x2f3   :  { %3180 = vmatprep.mubr.msk.f32.mxu1 %vm3429_vm3, %v3428_v6 }
 0x2f5   :  { %3159 = vmatmul.mubr.msk.f32.gmra.mrb[8].mxu0 %vm31_vm1, %v1028_v47 }
 0x2f6   :  { %3181 = vmatmul.mubr.msk.f32.gmra.mrb[12].mxu1 %vm31_vm1, %v1207_v49  ;;  %3163 = vmatprep.mubr.msk.f32.mxu0 %vm3429_vm3, %v3428_v6 }
 0x2f7   :  { %3196 = vmatprep.mubr.msk.f32.mxu1 %vm3429_vm3, %v3428_v6 }
 0x2f9   :  { %3164 = vmatmul.mubr.msk.f32.vlgmr.msra.gmra.mrb[10].mxu0 %vm31_vm1, %v1023_v50 }
 0x2fa   :  { %3166 = vmatprep.mubr.msk.f32.mxu0 %vm3429_vm3, %v3428_v6  ;;  %3184 = vmatpush3.msra.mxu0 %v3542_v31 }
 0x2fb   :  { %3205 = vmatprep.subr.mxu0 %v3428_v6 }
 0x2fd   :  { %3167 = vmatmul.mubr.msk.f32.gmra.mrb[12].mxu0 %vm31_vm1, %v3669_v51 }
 0x2fe   :  { %3169 = vmatprep.mubr.msk.f32.mxu0 %vm3429_vm3, %v3428_v6 }
 0x301   :  { %3170 = vmatmul.mubr.msk.f32.gmra.mrb[14].mxu0 %vm31_vm1, %v1025_v52 }
 0x302   :  { %3185 = vmatprep.mubr.msk.f32.mxu0 %vm3429_vm3, %v3428_v6 }
 0x3c0   :  { %v1104_v53 = vpop.f32.mrb[4].mxu0 }
 0x3c1   :  { %v1283_v54 = vpop.f32.mrb[8].mxu1  ;;  %v3154_v55 = vpop.f32.mrb[5].mxu0 }
 0x3c2   :  { %v3176_v56 = vpop.f32.mrb[9].mxu1 }
 0x3c4   :  { %v1109_v57 = vpop.f32.mrb[6].mxu0 }
 0x3c5   :  { %v1288_v58 = vpop.f32.mrb[10].mxu1  ;;  %v3157_v60 = vpop.f32.mrb[7].mxu0 }
 0x3c6   :  { %v3179_v61 = vpop.f32.mrb[11].mxu1 }
 0x3c8   :  { %v1113_v62 = vpop.f32.mrb[8].mxu0 }
 0x3c9   :  { %v1292_v63 = vpop.f32.mrb[12].mxu1  ;;  %v3160_v0 = vpop.f32.mrb[9].mxu0 }
 0x3ca   :  { %v3182_v1 = vpop.f32.mrb[13].mxu1 }
 0x3cc   :  { %v1192_v2 = vpop.f32.mrb[10].mxu0 }
 0x3cd   :  { %v1193_v3 = vadd.f32 %v1192_v2, %v1104_v53  ;;  %v3165_v4 = vpop.f32.mrb[11].mxu0 }
 0x3cf   :  { %v1296_v5 = vadd.f32 %v1283_v54, %v1193_v3 }
 0x3d0   :  { %v1197_v7 = vpop.f32.mrb[12].mxu0 }
 0x3d1   :  { %v1298_v8 = vadd.f32 %v3587_v59, %v1296_v5  ;;  %v3168_v9 = vpop.f32.mrb[13].mxu0 }
 0x3d3   :  { %v1300_v10 = vmax.f32 %v1298_v8, 0.0 }
 0x3d4   :  { %v1201_v11 = vpop.f32.mrb[14].mxu0 }
 0x3d5   :  { %1302 = vst.msk [vmem:[#allocation2 + $0x1] sm:$0x7f] %vm1020_vm5, %v1300_v10  ;;  %v1202_v12 = vadd.f32 %v1201_v11, %v1113_v62  ;;  %v3171_v13 = vpop.f32.mrb[15].mxu0 }
 0x3d7   :  { %v1297_v14 = vadd.f32 %v1292_v63, %v1202_v12 }
 0x3d9   :  { %v1299_v15 = vadd.f32 %v3587_v59, %v1297_v14 }
 0x3db   :  { %v1301_v16 = vmax.f32 %v1299_v15, 0.0 }
 0x3dc   :  { %v1307_v17 = vld [vmem:[#allocation2 + $0x1] sm:$0xff] }
 0x3dd   :  { %v1304_v18 = vld [vmem:[#allocation2] sm:$0xff]  ;;  %1303 = vst.msk [vmem:[#allocation2 + $0x11] sm:$0x7f] %vm1020_vm5, %v1301_v16  ;;  %3186 = vmatmul.mubr.msk.f32.vlgmr.msra.gmra.mrb[16].mxu0 %vm31_vm1, %v1307_v17 }
 0x3de   :  { %3197 = vmatmul.mubr.msk.f32.vlgmr.msra.gmra.mrb[14].mxu1 %vm31_vm1, %v1304_v18  ;;  %3206 = vmatpush3.msra.mxu0 %v3565_v48  ;;  %v1486_v21 = vld [vmem:[#allocation2 + $0x2] sm:$0xff] }
 0x3df   :  { %3188 = vmatprep.mubr.msk.f32.mxu0 %vm3429_vm3, %v3428_v6  ;;  %3199 = vmatprep.mubr.msk.f32.mxu1 %vm3429_vm3, %v3428_v6 }
 0x3e0   :  { %3217 = vmatpush3.msra.mxu1 %v3542_v31  ;;  %3227 = vmatprep.subr.mxu0 %v3428_v6 }
 0x3e1   :  { %3238 = vmatprep.subr.mxu1 %v3428_v6  ;;  %3189 = vmatmul.mubr.msk.f32.gmra.mrb[18].mxu0 %vm31_vm1, %v3647_v45 }
 0x3e2   :  { %3200 = vmatmul.mubr.msk.f32.gmra.mrb[16].mxu1 %vm31_vm1, %v3669_v51  ;;  %3191 = vmatprep.mubr.msk.f32.mxu0 %vm3429_vm3, %v3428_v6 }
 0x3e3   :  { %3202 = vmatprep.mubr.msk.f32.mxu1 %vm3429_vm3, %v3428_v6 }
 0x3e4   :  { %v1309_v19 = vld [vmem:[#allocation2 + $0x11] sm:$0x7f] }
 0x3e5   :  { %v1306_v20 = vld [vmem:[#allocation2 + $0x10] sm:$0x7f]  ;;  %3192 = vmatmul.mubr.msk.f32.gmra.mrb[20].mxu0 %vm31_vm1, %v1309_v19 }
 0x3e6   :  { %3203 = vmatmul.mubr.msk.f32.gmra.mrb[18].mxu1 %vm31_vm1, %v1306_v20  ;;  %3207 = vmatprep.mubr.msk.f32.mxu0 %vm3429_vm3, %v3428_v6  ;;  %v1487_v22 = vld [vmem:[#allocation2 + $0xa] sm:$0xff]  ;;  %v1488_v23 = vld [vmem:[#allocation2 + $0x12] sm:$0x7f] }
 0x3e7   :  { %3218 = vmatprep.mubr.msk.f32.mxu1 %vm3429_vm3, %v3428_v6 }
 0x3e9   :  { %3208 = vmatmul.mubr.msk.f32.vlgmr.msra.gmra.mrb[22].mxu0 %vm31_vm1, %v1486_v21 }
 0x3ea   :  { %3210 = vmatprep.mubr.msk.f32.mxu0 %vm3429_vm3, %v3428_v6  ;;  %3228 = vmatpush3.msra.mxu0 %v3551_v32 }
 0x3eb   :  { %3249 = vmatprep.subr.mxu0 %v3428_v6 }
 0x3ed   :  { %3211 = vmatmul.mubr.msk.f32.gmra.mrb[24].mxu0 %vm31_vm1, %v1487_v22 }
 0x3ee   :  { %3213 = vmatprep.mubr.msk.f32.mxu0 %vm3429_vm3, %v3428_v6 }
 0x3f1   :  { %3214 = vmatmul.mubr.msk.f32.gmra.mrb[26].mxu0 %vm31_vm1, %v1488_v23 }
 0x3f2   :  { %3229 = vmatprep.mubr.msk.f32.mxu0 %vm3429_vm3, %v3428_v6 }
 0x4b0   :  { %v1385_v24 = vpop.f32.mrb[16].mxu0 }
 0x4b1   :  { %v1473_v25 = vpop.f32.mrb[14].mxu1  ;;  %v3187_v27 = vpop.f32.mrb[17].mxu0 }
 0x4b2   :  { %v1474_v26 = vadd.f32 %v1473_v25, %v1385_v24  ;;  %v3198_v28 = vpop.f32.mrb[15].mxu1 }
 0x4b4   :  { %v1390_v29 = vpop.f32.mrb[18].mxu0 }
 0x4b5   :  { %v1478_v30 = vpop.f32.mrb[16].mxu1  ;;  %v3190_v33 = vpop.f32.mrb[19].mxu0 }
 0x4b6   :  { %v3201_v34 = vpop.f32.mrb[17].mxu1 }
 0x4b8   :  { %v1394_v36 = vpop.f32.mrb[20].mxu0 }
 0x4b9   :  { %v1482_v37 = vpop.f32.mrb[18].mxu1  ;;  %v3193_v39 = vpop.f32.mrb[21].mxu0 }
 0x4ba   :  { %v1483_v38 = vadd.f32 %v1482_v37, %v1394_v36  ;;  %v3204_v40 = vpop.f32.mrb[19].mxu1 }
 0x4bc   :  { %v1564_v42 = vpop.f32.mrb[22].mxu0 }
 0x4bd   :  { %v1577_v43 = vadd.f32 %v1564_v42, %v1474_v26  ;;  %v3209_v44 = vpop.f32.mrb[23].mxu0 }
 0x4bf   :  { %v1579_v46 = vadd.f32 %v3587_v59, %v1577_v43 }
 0x4c0   :  { %v1569_v47 = vpop.f32.mrb[24].mxu0 }
 0x4c1   :  { %v1581_v49 = vadd.f32 %v1579_v46, %v3629_v35  ;;  %v3212_v50 = vpop.f32.mrb[25].mxu0 }
 0x4c3   :  { %1583 = vst.msk [vmem:[#allocation2 + $0x1] sm:$0x7f] %vm1020_vm5, %v1581_v49 }
 0x4c4   :  { %v1573_v52 = vpop.f32.mrb[26].mxu0 }
 0x4c5   :  { %v1578_v53 = vadd.f32 %v1573_v52, %v1483_v38  ;;  %v3215_v54 = vpop.f32.mrb[27].mxu0 }
 0x4c7   :  { %v1580_v55 = vadd.f32 %v3587_v59, %v1578_v53 }
 0x4c9   :  { %v1582_v56 = vadd.f32 %v1580_v55, %v3635_v41 }
 0x4ca   :  { %v1585_v57 = vld [vmem:[#allocation2 + $0x1] ss:$2 sm:$0x7]  ;;  %v1586_v58 = vld [vmem:[#allocation2 + $0x2] ss:$2 sm:$0x7] }
 0x4cb   :  { %1584 = vst.msk [vmem:[#allocation2 + $0x11] sm:$0x7f] %vm1020_vm5, %v1582_v56  ;;  %v1588_v60 = vmax.f32 %v1585_v57, %v1586_v58  ;;  %v1587_v61 = vld [vmem:[#allocation2 + $0x3] ss:$2 sm:$0x7] }
 0x4cc   :  { %1597 = vst.msk [vmem:[#allocation2 + $0x4] sm:$0x1] %vm1017_vm4, %v3428_v6 }
 0x4cd   :  { %v3725_v35 = vmax.f32 %v1588_v60, %v1587_v61 }
 0x4cf   :  { %v1595_v62 = vmax.f32 %v3725_v35, 0.0 }
 0x4d1   :  { %1600 = vst.msk [vmem:[#allocation2 + $0x1] sm:$0x7] %vm1599_vm6, %v1595_v62 }
 0x4d2   :  { %v1590_v63 = vld [vmem:[#allocation2 + $0x11] ss:$2 sm:$0x7]  ;;  %v1591_v0 = vld [vmem:[#allocation2 + $0x12] ss:$2 sm:$0x7] }
 0x4d3   :  { %v1593_v1 = vmax.f32 %v1590_v63, %v1591_v0  ;;  %1598 = vst.msk [vmem:[#allocation2 + $0x14] sm:$0x1] %vm1017_vm4, %v3428_v6  ;;  %v1592_v41 = vld [vmem:[#allocation2 + $0x13] ss:$2 sm:$0x7] }
 0x4d5   :  { %v3731_v2 = vmax.f32 %v1593_v1, %v1592_v41 }
 0x4d7   :  { %v1596_v3 = vmax.f32 %v3731_v2, 0.0 }
 0x4d8   :  { %v1605_v4 = vld [vmem:[#allocation2 + $0x1] sm:$0xff] }
 0x4d9   :  { %v1602_v5 = vld [vmem:[#allocation2] sm:$0xff]  ;;  %3219 = vmatmul.mubr.msk.f32.vlgmr.msra.gmra.mrb[20].mxu1 %vm31_vm1, %v1605_v4  ;;  %1601 = vst.msk [vmem:[#allocation2 + $0x11] sm:$0x7] %vm1599_vm6, %v1596_v3 }
 0x4da   :  { %3230 = vmatmul.mubr.msk.f32.vlgmr.msra.gmra.mrb[28].mxu0 %vm31_vm1, %v1602_v5  ;;  %3239 = vmatpush3.msra.mxu1 %v3565_v48  ;;  %v1784_v9 = vld [vmem:[#allocation2 + $0x2] sm:$0xff] }
 0x4db   :  { %3221 = vmatprep.mubr.msk.f32.mxu1 %vm3429_vm3, %v3428_v6  ;;  %3232 = vmatprep.mubr.msk.f32.mxu0 %vm3429_vm3, %v3428_v6 }
 0x4dc   :  { %3250 = vmatpush3.msra.mxu0 %v3542_v31  ;;  %3260 = vmatprep.subr.mxu1 %v3428_v6 }
 0x4dd   :  { %3271 = vmatprep.subr.mxu0 %v3428_v6  ;;  %3222 = vmatmul.mubr.msk.f32.gmra.mrb[22].mxu1 %vm31_vm1, %v3647_v45 }
 0x4de   :  { %3233 = vmatmul.mubr.msk.f32.gmra.mrb[30].mxu0 %vm31_vm1, %v3669_v51  ;;  %3224 = vmatprep.mubr.msk.f32.mxu1 %vm3429_vm3, %v3428_v6 }
 0x4df   :  { %3235 = vmatprep.mubr.msk.f32.mxu0 %vm3429_vm3, %v3428_v6 }
 0x4e0   :  { %v1607_v7 = vld [vmem:[#allocation2 + $0x11] sm:$0x7] }
 0x4e1   :  { %v1604_v8 = vld [vmem:[#allocation2 + $0x10] sm:$0x7]  ;;  %3225 = vmatmul.mubr.msk.f32.gmra.mrb[24].mxu1 %vm31_vm1, %v1607_v7 }
 0x4e2   :  { %3236 = vmatmul.mubr.msk.f32.gmra.mrb[32].mxu0 %vm31_vm1, %v1604_v8  ;;  %3240 = vmatprep.mubr.msk.f32.mxu1 %vm3429_vm3, %v3428_v6  ;;  %v1785_v10 = vld [vmem:[#allocation2 + $0xa] sm:$0xff]  ;;  %v1786_v11 = vld [vmem:[#allocation2 + $0x12] sm:$0x7] }
 0x4e3   :  { %3251 = vmatprep.mubr.msk.f32.mxu0 %vm3429_vm3, %v3428_v6 }
 0x4e5   :  { %3241 = vmatmul.mubr.msk.f32.vlgmr.msra.gmra.mrb[26].mxu1 %vm31_vm1, %v1784_v9 }
 0x4e6   :  { %3243 = vmatprep.mubr.msk.f32.mxu1 %vm3429_vm3, %v3428_v6  ;;  %3261 = vmatpush3.msra.mxu1 %v3551_v32 }
 0x4e7   :  { %3282 = vmatprep.subr.mxu1 %v3428_v6 }
 0x4e9   :  { %3244 = vmatmul.mubr.msk.f32.gmra.mrb[28].mxu1 %vm31_vm1, %v1785_v10 }
 0x4ea   :  { %3246 = vmatprep.mubr.msk.f32.mxu1 %vm3429_vm3, %v3428_v6 }
 0x4ed   :  { %3247 = vmatmul.mubr.msk.f32.gmra.mrb[30].mxu1 %vm31_vm1, %v1786_v11 }
 0x4ee   :  { %3262 = vmatprep.mubr.msk.f32.mxu1 %vm3429_vm3, %v3428_v6 }
 0x5ac   :  { %v1683_v12 = vpop.f32.mrb[20].mxu1 }
 0x5ad   :  { %v1771_v13 = vpop.f32.mrb[28].mxu0  ;;  %v3220_v15 = vpop.f32.mrb[21].mxu1 }
 0x5ae   :  { %v1772_v14 = vadd.f32 %v1771_v13, %v1683_v12  ;;  %v3231_v16 = vpop.f32.mrb[29].mxu0 }
 0x5b0   :  { %v1688_v17 = vpop.f32.mrb[22].mxu1 }
 0x5b1   :  { %v1776_v18 = vpop.f32.mrb[30].mxu0  ;;  %v3223_v19 = vpop.f32.mrb[23].mxu1 }
 0x5b2   :  { %v3234_v20 = vpop.f32.mrb[31].mxu0 }
 0x5b4   :  { %v1692_v21 = vpop.f32.mrb[24].mxu1 }
 0x5b5   :  { %v1780_v22 = vpop.f32.mrb[32].mxu0  ;;  %v3226_v24 = vpop.f32.mrb[25].mxu1 }
 0x5b6   :  { %v1781_v23 = vadd.f32 %v1780_v22, %v1692_v21  ;;  %v3237_v25 = vpop.f32.mrb[33].mxu0 }
 0x5b8   :  { %v1862_v26 = vpop.f32.mrb[26].mxu1 }
 0x5b9   :  { %v1875_v27 = vadd.f32 %v1862_v26, %v1772_v14  ;;  %v3242_v28 = vpop.f32.mrb[27].mxu1 }
 0x5ba   :  { %v2182_v28 = vld [vmem:[#allocation2 + $0x10] sm:$0x1] }
 0x5bb   :  { %v1877_v29 = vadd.f32 %v3587_v59, %v1875_v27 }
 0x5bc   :  { %v1867_v30 = vpop.f32.mrb[28].mxu1 }
 0x5bd   :  { %v1879_v33 = vmax.f32 %v1877_v29, 0.0  ;;  %v3245_v34 = vpop.f32.mrb[29].mxu1 }
 0x5bf   :  { %1881 = vst.msk [vmem:[#allocation2 + $0x1] sm:$0x7] %vm1599_vm6, %v1879_v33 }
 0x5c0   :  { %v1871_v36 = vpop.f32.mrb[30].mxu1 }
 0x5c1   :  { %v1876_v37 = vadd.f32 %v1871_v36, %v1781_v23  ;;  %v3248_v38 = vpop.f32.mrb[31].mxu1 }
 0x5c3   :  { %v1878_v39 = vadd.f32 %v3587_v59, %v1876_v37 }
 0x5c5   :  { %v1880_v40 = vmax.f32 %v1878_v39, 0.0 }
 0x5c6   :  { %v1886_v42 = vld [vmem:[#allocation2 + $0x1] sm:$0xff] }
 0x5c7   :  { %v1883_v43 = vld [vmem:[#allocation2] sm:$0xff]  ;;  %1882 = vst.msk [vmem:[#allocation2 + $0x11] sm:$0x7] %vm1599_vm6, %v1880_v40  ;;  %3252 = vmatmul.mubr.msk.f32.vlgmr.msra.gmra.mrb[34].mxu0 %vm31_vm1, %v1886_v42 }
 0x5c8   :  { %3263 = vmatmul.mubr.msk.f32.vlgmr.msra.gmra.mrb[32].mxu1 %vm31_vm1, %v1883_v43  ;;  %3272 = vmatpush3.msra.mxu0 %v3565_v48  ;;  %v2065_v47 = vld [vmem:[#allocation2 + $0x2] sm:$0xff] }
 0x5c9   :  { %3254 = vmatprep.mubr.msk.f32.mxu0 %vm3429_vm3, %v3428_v6  ;;  %3265 = vmatprep.mubr.msk.f32.mxu1 %vm3429_vm3, %v3428_v6 }
 0x5ca   :  { %3283 = vmatpush3.msra.mxu1 %v3542_v31  ;;  %3293 = vmatprep.subr.mxu0 %v3428_v6 }
 0x5cb   :  { %3304 = vmatprep.subr.mxu1 %v3428_v6  ;;  %3255 = vmatmul.mubr.msk.f32.gmra.mrb[36].mxu0 %vm31_vm1, %v3647_v45 }
 0x5cc   :  { %3266 = vmatmul.mubr.msk.f32.gmra.mrb[34].mxu1 %vm31_vm1, %v3669_v51  ;;  %3257 = vmatprep.mubr.msk.f32.mxu0 %vm3429_vm3, %v3428_v6 }
 0x5cd   :  { %3268 = vmatprep.mubr.msk.f32.mxu1 %vm3429_vm3, %v3428_v6 }
 0x5ce   :  { %v1888_v44 = vld [vmem:[#allocation2 + $0x11] sm:$0x7] }
 0x5cf   :  { %v1885_v46 = vld [vmem:[#allocation2 + $0x10] sm:$0x7]  ;;  %3258 = vmatmul.mubr.msk.f32.gmra.mrb[38].mxu0 %vm31_vm1, %v1888_v44 }
 0x5d0   :  { %3269 = vmatmul.mubr.msk.f32.gmra.mrb[36].mxu1 %vm31_vm1, %v1885_v46  ;;  %3273 = vmatprep.mubr.msk.f32.mxu0 %vm3429_vm3, %v3428_v6  ;;  %v2066_v49 = vld [vmem:[#allocation2 + $0xa] sm:$0xff]  ;;  %v2067_v50 = vld [vmem:[#allocation2 + $0x12] sm:$0x7] }
 0x5d1   :  { %3284 = vmatprep.mubr.msk.f32.mxu1 %vm3429_vm3, %v3428_v6 }
 0x5d3   :  { %3274 = vmatmul.mubr.msk.f32.vlgmr.msra.gmra.mrb[40].mxu0 %vm31_vm1, %v2065_v47 }
 0x5d4   :  { %3276 = vmatprep.mubr.msk.f32.mxu0 %vm3429_vm3, %v3428_v6  ;;  %3294 = vmatpush3.msra.mxu0 %v3551_v32 }
 0x5d5   :  { %3315 = vmatprep.subr.mxu0 %v3428_v6 }
 0x5d7   :  { %3277 = vmatmul.mubr.msk.f32.gmra.mrb[42].mxu0 %vm31_vm1, %v2066_v49 }
 0x5d8   :  { %3279 = vmatprep.mubr.msk.f32.mxu0 %vm3429_vm3, %v3428_v6 }
 0x5db   :  { %3280 = vmatmul.mubr.msk.f32.gmra.mrb[44].mxu0 %vm31_vm1, %v2067_v50 }
 0x5dc   :  { %3295 = vmatprep.mubr.msk.f32.mxu0 %vm3429_vm3, %v3428_v6 }
 0x69a   :  { %v1964_v52 = vpop.f32.mrb[34].mxu0 }
 0x69b   :  { %v2052_v53 = vpop.f32.mrb[32].mxu1  ;;  %v3253_v55 = vpop.f32.mrb[35].mxu0 }
 0x69c   :  { %v2053_v54 = vadd.f32 %v2052_v53, %v1964_v52  ;;  %v3264_v56 = vpop.f32.mrb[33].mxu1 }
 0x69e   :  { %v1969_v57 = vpop.f32.mrb[36].mxu0 }
 0x69f   :  { %v2057_v58 = vpop.f32.mrb[34].mxu1  ;;  %v3256_v60 = vpop.f32.mrb[37].mxu0 }
 0x6a0   :  { %v3267_v61 = vpop.f32.mrb[35].mxu1 }
 0x6a2   :  { %v1973_v62 = vpop.f32.mrb[38].mxu0 }
 0x6a3   :  { %v2061_v63 = vpop.f32.mrb[36].mxu1  ;;  %v3259_v1 = vpop.f32.mrb[39].mxu0 }
 0x6a4   :  { %v2062_v0 = vadd.f32 %v2061_v63, %v1973_v62  ;;  %v3270_v41 = vpop.f32.mrb[37].mxu1 }
 0x6a6   :  { %v2143_v3 = vpop.f32.mrb[40].mxu0 }
 0x6a7   :  { %v2156_v4 = vadd.f32 %v2143_v3, %v2053_v54  ;;  %v3275_v5 = vpop.f32.mrb[41].mxu0  ;;  %v2463_v3 = vld [vmem:[#allocation2 + $0x10] sm:$0x1] }
 0x6a9   :  { %v2158_v7 = vadd.f32 %v3587_v59, %v2156_v4  ;;  %v29_v4 = vld [vmem:[%s3918_s1 + $0x88] sm:$0xff] }
 0x6aa   :  { %v2148_v8 = vpop.f32.mrb[42].mxu0 }
 0x6ab   :  { %v2160_v9 = vadd.f32 %v2158_v7, %v3725_v35  ;;  %v3278_v10 = vpop.f32.mrb[43].mxu0 }
 0x6ad   :  { %2162 = vst.msk [vmem:[#allocation2 + $0x1] sm:$0x7] %vm1599_vm6, %v2160_v9 }
 0x6ae   :  { %v2152_v11 = vpop.f32.mrb[44].mxu0 }
 0x6af   :  { %v2157_v12 = vadd.f32 %v2152_v11, %v2062_v0  ;;  %v3281_v13 = vpop.f32.mrb[45].mxu0 }
 0x6b1   :  { %v2159_v14 = vadd.f32 %v3587_v59, %v2157_v12 }
 0x6b3   :  { %v2161_v15 = vadd.f32 %v2159_v14, %v3731_v2 }
 0x6b4   :  { %v2164_v16 = vld [vmem:[#allocation2 + $0x1] ss:$2 sm:$0x1]  ;;  %v2165_v17 = vld [vmem:[#allocation2 + $0x2] ss:$2 sm:$0x1] }
 0x6b5   :  { %2163 = vst.msk [vmem:[#allocation2 + $0x11] sm:$0x7] %vm1599_vm6, %v2161_v15  ;;  %v2167_v18 = vmax.f32 %v2164_v16, %v2165_v17  ;;  %v2166_v19 = vld [vmem:[#allocation2 + $0x3] ss:$2 sm:$0x1] }
 0x6b6   :  { %2176 = vst.msk [vmem:[#allocation2 + $0x2] sm:$0x1] %vm1017_vm4, %v3428_v6 }
 0x6b7   :  { %v3817_v35 = vmax.f32 %v2167_v18, %v2166_v19 }
 0x6b9   :  { %v2174_v20 = vmax.f32 %v3817_v35, 0.0 }
 0x6bb   :  { %2178 = vst.msk [vmem:[#allocation2 + $0x1] sm:$0x1] %vm1017_vm4, %v2174_v20 }
 0x6bc   :  { %v2169_v21 = vld [vmem:[#allocation2 + $0x11] ss:$2 sm:$0x1]  ;;  %v2170_v22 = vld [vmem:[#allocation2 + $0x12] ss:$2 sm:$0x1] }
 0x6bd   :  { %v2172_v23 = vmax.f32 %v2169_v21, %v2170_v22  ;;  %2177 = vst.msk [vmem:[#allocation2 + $0x12] sm:$0x1] %vm1017_vm4, %v3428_v6  ;;  %v2171_v2 = vld [vmem:[#allocation2 + $0x13] ss:$2 sm:$0x1] }
 0x6bf   :  { %v3823_v24 = vmax.f32 %v2172_v23, %v2171_v2 }
 0x6c1   :  { %v2175_v25 = vmax.f32 %v3823_v24, 0.0 }
 0x6c2   :  { %v2183_v26 = vld [vmem:[#allocation2 + $0x1] sm:$0xff] }
 0x6c3   :  { %v2180_v27 = vld [vmem:[#allocation2] sm:$0xff]  ;;  %3285 = vmatmul.mubr.msk.f32.vlgmr.msra.gmra.mrb[38].mxu1 %vm31_vm1, %v2183_v26  ;;  %2179 = vst.msk [vmem:[#allocation2 + $0x11] sm:$0x1] %vm1017_vm4, %v2175_v25 }
 0x6c4   :  { %3296 = vmatmul.mubr.msk.f32.vlgmr.msra.gmra.mrb[46].mxu0 %vm31_vm1, %v2180_v27  ;;  %3305 = vmatpush3.msra.mxu1 %v3565_v48  ;;  %v2364_v33 = vld [vmem:[#allocation2 + $0x12] sm:$0x1] }
 0x6c5   :  { %3287 = vmatprep.mubr.msk.f32.mxu1 %vm3429_vm3, %v3428_v6  ;;  %3298 = vmatprep.mubr.msk.f32.mxu0 %vm3429_vm3, %v3428_v6 }
 0x6c6   :  { %3316 = vmatpush3.msra.mxu0 %v3542_v31  ;;  %3326 = vmatprep.subr.mxu1 %v3428_v6  ;;  %v2362_v31 = vld [vmem:[#allocation2 + $0x2] sm:$0xff] }
 0x6c7   :  { %3337 = vmatprep.subr.mxu0 %v3428_v6  ;;  %3288 = vmatmul.mubr.msk.f32.gmra.mrb[40].mxu1 %vm31_vm1, %v3647_v45 }
 0x6c8   :  { %3299 = vmatmul.mubr.msk.f32.gmra.mrb[48].mxu0 %vm31_vm1, %v3669_v51  ;;  %3290 = vmatprep.mubr.msk.f32.mxu1 %vm3429_vm3, %v3428_v6 }
 0x6c9   :  { %3301 = vmatprep.mubr.msk.f32.mxu0 %vm3429_vm3, %v3428_v6 }
 0x6ca   :  { %v2185_v29 = vld [vmem:[#allocation2 + $0x11] sm:$0x1] }
 0x6cb   :  { %3291 = vmatmul.mubr.msk.f32.gmra.mrb[42].mxu1 %vm31_vm1, %v2185_v29  ;;  %v2363_v30 = vld [vmem:[#allocation2 + $0xa] sm:$0xff] }
 0x6cc   :  { %3302 = vmatmul.mubr.msk.f32.gmra.mrb[50].mxu0 %vm31_vm1, %v2182_v28  ;;  %3306 = vmatprep.mubr.msk.f32.mxu1 %vm3429_vm3, %v3428_v6 }
 0x6cd   :  { %3317 = vmatprep.mubr.msk.f32.mxu0 %vm3429_vm3, %v3428_v6 }
 0x6cf   :  { %3307 = vmatmul.mubr.msk.f32.vlgmr.msra.gmra.mrb[44].mxu1 %vm31_vm1, %v2362_v31 }
 0x6d0   :  { %3309 = vmatprep.mubr.msk.f32.mxu1 %vm3429_vm3, %v3428_v6  ;;  %3327 = vmatpush3.msra.mxu1 %v3551_v32 }
 0x6d1   :  { %3348 = vmatprep.subr.mxu1 %v3428_v6 }
 0x6d3   :  { %3310 = vmatmul.mubr.msk.f32.gmra.mrb[46].mxu1 %vm31_vm1, %v2363_v30 }
 0x6d4   :  { %3312 = vmatprep.mubr.msk.f32.mxu1 %vm3429_vm3, %v3428_v6 }
 0x6d7   :  { %3313 = vmatmul.mubr.msk.f32.gmra.mrb[48].mxu1 %vm31_vm1, %v2364_v33 }
 0x6d8   :  { %3328 = vmatprep.mubr.msk.f32.mxu1 %vm3429_vm3, %v3428_v6 }
 0x796   :  { %v2261_v34 = vpop.f32.mrb[38].mxu1 }
 0x797   :  { %v2349_v36 = vpop.f32.mrb[46].mxu0  ;;  %v3286_v38 = vpop.f32.mrb[39].mxu1 }
 0x798   :  { %v2350_v37 = vadd.f32 %v2349_v36, %v2261_v34  ;;  %v3297_v39 = vpop.f32.mrb[47].mxu0  ;;  %v2930_v34 = vld [vmem:[%s3918_s1 + $0x90] ss:$0 sm:$0xff] }
 0x79a   :  { %v2266_v32 = vpop.f32.mrb[40].mxu1 }
 0x79b   :  { %v2354_v40 = vpop.f32.mrb[48].mxu0  ;;  %v3289_v42 = vpop.f32.mrb[41].mxu1 }
 0x79c   :  { %v3300_v43 = vpop.f32.mrb[49].mxu0 }
 0x79e   :  { %v2270_v44 = vpop.f32.mrb[42].mxu1 }
 0x79f   :  { %v2358_v46 = vpop.f32.mrb[50].mxu0  ;;  %v3292_v49 = vpop.f32.mrb[43].mxu1 }
 0x7a0   :  { %v2359_v47 = vadd.f32 %v2358_v46, %v2270_v44  ;;  %v3303_v50 = vpop.f32.mrb[51].mxu0 }
 0x7a2   :  { %v2440_v52 = vpop.f32.mrb[44].mxu1 }
 0x7a3   :  { %v2453_v53 = vadd.f32 %v2440_v52, %v2350_v37  ;;  %v3308_v54 = vpop.f32.mrb[45].mxu1 }
 0x7a5   :  { %v2455_v55 = vadd.f32 %v3587_v59, %v2453_v53 }
 0x7a6   :  { %v2445_v56 = vpop.f32.mrb[46].mxu1 }
 0x7a7   :  { %v2457_v57 = vmax.f32 %v2455_v55, 0.0  ;;  %v3311_v58 = vpop.f32.mrb[47].mxu1 }
 0x7a9   :  { %2459 = vst.msk [vmem:[#allocation2 + $0x1] sm:$0x1] %vm1017_vm4, %v2457_v57 }
 0x7aa   :  { %v2449_v60 = vpop.f32.mrb[48].mxu1 }
 0x7ab   :  { %v2454_v61 = vadd.f32 %v2449_v60, %v2359_v47  ;;  %v3314_v62 = vpop.f32.mrb[49].mxu1 }
 0x7ad   :  { %v2456_v63 = vadd.f32 %v3587_v59, %v2454_v61 }
 0x7af   :  { %v2458_v0 = vmax.f32 %v2456_v63, 0.0 }
 0x7b0   :  { %v2464_v1 = vld [vmem:[#allocation2 + $0x1] sm:$0xff] }
 0x7b1   :  { %v2461_v41 = vld [vmem:[#allocation2] sm:$0xff]  ;;  %2460 = vst.msk [vmem:[#allocation2 + $0x11] sm:$0x1] %vm1017_vm4, %v2458_v0  ;;  %3318 = vmatmul.mubr.msk.f32.vlgmr.msra.gmra.mrb[52].mxu0 %vm31_vm1, %v2464_v1 }
 0x7b2   :  { %3329 = vmatmul.mubr.msk.f32.vlgmr.msra.gmra.mrb[50].mxu1 %vm31_vm1, %v2461_v41  ;;  %3338 = vmatpush3.msra.mxu0 %v3565_v48 }
 0x7b3   :  { %3320 = vmatprep.mubr.msk.f32.mxu0 %vm3429_vm3, %v3428_v6  ;;  %3331 = vmatprep.mubr.msk.f32.mxu1 %vm3429_vm3, %v3428_v6 }
 0x7b4   :  { %3349 = vmatpush3.msra.mxu1 %v29_v4 }
 0x7b5   :  { %3321 = vmatmul.mubr.msk.f32.gmra.mrb[54].mxu0 %vm31_vm1, %v3647_v45 }
 0x7b6   :  { %3332 = vmatmul.mubr.msk.f32.gmra.mrb[52].mxu1 %vm31_vm1, %v3669_v51  ;;  %3323 = vmatprep.mubr.msk.f32.mxu0 %vm3429_vm3, %v3428_v6  ;;  %v2645_v51 = vld [vmem:[#allocation2 + $0x12] sm:$0x1] }
 0x7b7   :  { %3334 = vmatprep.mubr.msk.f32.mxu1 %vm3429_vm3, %v3428_v6 }
 0x7b8   :  { %v2466_v48 = vld [vmem:[#allocation2 + $0x11] sm:$0x1] }
 0x7b9   :  { %3324 = vmatmul.mubr.msk.f32.gmra.mrb[56].mxu0 %vm31_vm1, %v2466_v48  ;;  %v2644_v45 = vld [vmem:[#allocation2 + $0xa] sm:$0xff] }
 0x7ba   :  { %3335 = vmatmul.mubr.msk.f32.gmra.mrb[54].mxu1 %vm31_vm1, %v2463_v3  ;;  %3339 = vmatprep.mubr.msk.f32.mxu0 %vm3429_vm3, %v3428_v6 }
 0x7bb   :  { %3350 = vmatprep.mubr.msk.f32.mxu1 %vm3429_vm3, %v3428_v6 }
 0x7bd   :  { %3340 = vmatmul.mubr.msk.f32.vlgmr.msra.gmra.mrb[58].mxu0 %vm31_vm1, %v2362_v31 }
 0x7be   :  { %3342 = vmatprep.mubr.msk.f32.mxu0 %vm3429_vm3, %v3428_v6 }
 0x7c1   :  { %3343 = vmatmul.mubr.msk.f32.gmra.mrb[60].mxu0 %vm31_vm1, %v2644_v45 }
 0x7c2   :  { %3345 = vmatprep.mubr.msk.f32.mxu0 %vm3429_vm3, %v3428_v6 }
 0x7c5   :  { %3346 = vmatmul.mubr.msk.f32.gmra.mrb[62].mxu0 %vm31_vm1, %v2645_v51 }
 0x884   :  { %v2542_v5 = vpop.f32.mrb[52].mxu0 }
 0x885   :  { %v2630_v7 = vpop.f32.mrb[50].mxu1  ;;  %v3319_v9 = vpop.f32.mrb[53].mxu0 }
 0x886   :  { %v2631_v8 = vadd.f32 %v2630_v7, %v2542_v5  ;;  %v3330_v10 = vpop.f32.mrb[51].mxu1 }
 0x888   :  { %v2547_v11 = vpop.f32.mrb[54].mxu0 }
 0x889   :  { %v2635_v12 = vpop.f32.mrb[52].mxu1  ;;  %v3322_v13 = vpop.f32.mrb[55].mxu0 }
 0x88a   :  { %v3333_v14 = vpop.f32.mrb[53].mxu1 }
 0x88c   :  { %v2551_v15 = vpop.f32.mrb[56].mxu0 }
 0x88d   :  { %v2639_v16 = vpop.f32.mrb[54].mxu1  ;;  %v3325_v17 = vpop.f32.mrb[57].mxu0 }
 0x88e   :  { %v2640_v6 = vadd.f32 %v2639_v16, %v2551_v15  ;;  %v3336_v18 = vpop.f32.mrb[55].mxu1 }
 0x890   :  { %v2721_v19 = vpop.f32.mrb[58].mxu0 }
 0x891   :  { %v2734_v20 = vadd.f32 %v2721_v19, %v2631_v8  ;;  %v3341_v21 = vpop.f32.mrb[59].mxu0 }
 0x893   :  { %v2736_v27 = vadd.f32 %v3587_v59, %v2734_v20 }
 0x894   :  { %v2726_v22 = vpop.f32.mrb[60].mxu0 }
 0x895   :  { %v3344_v23 = vpop.f32.mrb[61].mxu0  ;;  %v2738_v31 = vadd.f32 %v2736_v27, %v3817_v35 }
 0x898   :  { %v2730_v2 = vpop.f32.mrb[62].mxu0 }
 0x899   :  { %v2735_v25 = vadd.f32 %v2730_v2, %v2640_v6  ;;  %v3347_v26 = vpop.f32.mrb[63].mxu0 }
 0x89b   :  { %v2737_v28 = vadd.f32 %v3587_v59, %v2735_v25 }
 0x89d   :  { %v2739_v29 = vadd.f32 %v2737_v28, %v3823_v24 }
 0x89f   :  { %v2741_v30 = vrot.slane %v2739_v29, 7 }
 0x8a1   :  { %v2744_v33 = vsel %vm2743_vm7, %v2738_v31, %v2741_v30 }
 0x8a2   :  { %3351 = vmatmul.mubr.msk.f32.vlgmr.msra.gmra.mrb[56].mxu1 %vm31_vm1, %v2744_v33 }
 0x975   :  { %v2818_v36 = vpop.f32.mrb[56].mxu1 }
 0x976   :  { %v2819_v37 = vadd.f32 %v2930_v34, %v2818_v36  ;;  %v3352_v38 = vpop.f32.mrb[57].mxu1 }
 0x978   :  { %2823 = vst.msk [vmem:[#allocation3] sm:$0x3] %vm2822_vm8, %v2819_v37 }
 0x979   :  { %3415 = shalt.err (!%p3412_p4)
}
 0x97a   :  { %s3416_s19 = scalar_lea.hbm %s3919_s2, 32 }
 0x97b   :  { %p3417_p5 = scmp.ne.s32.totalorder %s3919_s2, %s3416_s19  ;;  %p3420_p6 = scmp.lt.u32.totalorder %s3416_s19, %s3919_s2 }
 0x97d   :  { %p3422_p7 = pnand %p3420_p6, %p3417_p5 }
 0x97f   :  { %3425 = shalt.err (!%p3422_p7)
}
 0x980   :  { %2833 = dma.vmem_to_hbm [thread:$0]  %s2831_s15, 32, %s3919_s2, [#allocation4]  }
 0x981   :  { %3426 = dma.done.wait [#allocation4], 32  }
 0x982   :  { %3427 = vsyncadd [#allocation4], 4294967264 }
 0x983   :  { %2837 = vsyncpa [#allocation4], 1 }

</bundles_post_ra>
